<compile_context>
chip_gen: v7x
topology: tpu7x:2x2x1
jax: 0.10.0
libtpu: 0.0.40
codegen_flags: <defaults>
</compile_context>

<pallas_src>
import functools

import jax
import jax.numpy as jnp
from jax.experimental import pallas as pl
from jax.experimental.pallas import tpu as pltpu


# Interior placement inside the padded scratch plane: row offset 8 keeps the
# interior store sublane-aligned (f32 sublane tile = 8); column offset 1 is the
# 1-pixel left halo (in-tile lane rotation).  The zero halo ring read by the
# conv sits at rows PAD_T-1 / PAD_T+H and cols 0 / PAD_L+W.
_PAD_T = 8
_PAD_L = 1


def _gaussian_prior_kernel(w_ref, b_ref, eps_ref, x_ref, noise_ref, z_ref,
                           xpad_ref, *, H, W, C, NB):
    # w_ref:    SMEM (2*C*9,)  conv weight, flattened [out, in, ky, kx]
    # b_ref:    SMEM (2,)      conv bias
    # eps_ref:  SMEM (1,)      eps scale (runtime value)
    # x_ref:    VMEM (NB, C, H, W)   unpadded feature-map block
    # noise_ref:VMEM (NB, H, W)      standard-normal noise block
    # z_ref:    VMEM (NB, H, W)      output sample block
    # xpad_ref: VMEM (C, PAD_T+H+1, W+2) f32 scratch (zero-padded planes)
    eps = eps_ref[0]

    # Zero the scratch every grid step (do NOT gate on program_id == 0: with a
    # "parallel" grid each TensorCore starts at an arbitrary step).  Only the
    # interior is rewritten below, so the zero halo survives per batch element.
    xpad_ref[...] = jnp.zeros_like(xpad_ref)

    # Hoist SMEM scalar reads and bias broadcasts out of the unrolled loops.
    w_mean = [w_ref[c * 9 + t] for c in range(C) for t in range(9)]
    w_sig = [w_ref[C * 9 + c * 9 + t] for c in range(C) for t in range(9)]
    bias_mean = jnp.full((H, W), b_ref[0], dtype=jnp.float32)
    bias_sig = jnp.full((H, W), b_ref[1], dtype=jnp.float32)

    for b in range(NB):  # NB is small and static -> fully unrolled
        # Fold the conv's zero padding into the kernel: copy the unpadded block
        # into the scratch interior (sublane-aligned row offset, 1-lane shift).
        xpad_ref[:, _PAD_T:_PAD_T + H, _PAD_L:_PAD_L + W] = (
            x_ref[b].astype(jnp.float32))

        acc_mean = bias_mean
        acc_sig = bias_sig
        # 3x3 conv, padding=1, unrolled over input channels and taps (VPU path).
        for c in range(C):
            for ky in range(3):
                r0 = _PAD_T - 1 + ky
                for kx in range(3):
                    c0 = _PAD_L - 1 + kx
                    patch = xpad_ref[c, r0:r0 + H, c0:c0 + W]
                    t = c * 9 + ky * 3 + kx
                    acc_mean = acc_mean + w_mean[t] * patch
                    acc_sig = acc_sig + w_sig[t] * patch

        # TODO(synk): PyTorch computes softplus on float64; TPU has no f64, so
        # sigma is computed in f32 (differences at the ~1e-7 level).
        sigma = jax.nn.softplus(acc_sig)
        scale = sigma * eps + 1e-5
        z_ref[b] = (acc_mean + scale * noise_ref[b]).astype(z_ref.dtype)


def _pick_block_n(n):
    """Pack batch elements per grid step, keeping >=2 steps for v7x's 2 TCs."""
    if n < 4:
        return 1
    best = 1
    for cand in range(2, min(8, n // 2) + 1):
        if n % cand == 0:
            best = cand
    return best


def gaussian_prior_forward(feat_map, weight, bias, noise, eps=1.0, block_n=None):
    """feat_map: (N, C, H, W); weight: (2, C, 3, 3); bias: (2,); noise: (N, H, W).

    Returns z of shape (N, 1, H, W) float32, matching GaussianPrior.forward.
    """
    N, C, H, W = feat_map.shape
    if block_n is None:
        block_n = _pick_block_n(N)
    if N % block_n != 0:
        raise ValueError(f"block_n={block_n} must divide N={N}")

    x = feat_map.astype(jnp.float32)
    w_flat = weight.reshape(-1).astype(jnp.float32)
    b = bias.astype(jnp.float32)
    eps_arr = jnp.full((1,), eps, dtype=jnp.float32)
    noise = noise.astype(jnp.float32)

    kernel = functools.partial(_gaussian_prior_kernel, H=H, W=W, C=C, NB=block_n)

    z = pl.pallas_call(
        kernel,
        out_shape=jax.ShapeDtypeStruct((N, H, W), jnp.float32),
        grid_spec=pltpu.PrefetchScalarGridSpec(
            num_scalar_prefetch=3,            # conv weight, bias, eps -> SMEM
            grid=(N // block_n,),
            in_specs=[
                pl.BlockSpec((block_n, C, H, W), lambda i, w, b, e: (i, 0, 0, 0)),
                pl.BlockSpec((block_n, H, W), lambda i, w, b, e: (i, 0, 0)),
            ],
            out_specs=pl.BlockSpec((block_n, H, W), lambda i, w, b, e: (i, 0, 0)),
            scratch_shapes=[
                pltpu.VMEM((C, _PAD_T + H + 1, W + 2), jnp.float32),
            ],
        ),
        compiler_params=pltpu.CompilerParams(dimension_semantics=("parallel",)),
    )(w_flat, b, eps_arr, x, noise)

    return z.reshape(N, 1, H, W)


if __name__ == "__main__":
    key = jax.random.PRNGKey(0)
    kw, kb, kx, kn = jax.random.split(key, 4)

    N, C, H, W = 2, 4, 16, 16
    cond_channels = 8  # stored on the PyTorch module but unused by forward()

    # Deterministic synthetic parameters (nn.Conv2d(in_c, 2, 3, 1, 1) shapes).
    weight = 0.1 * jax.random.normal(kw, (2, C, 3, 3), dtype=jnp.float32)
    bias = 0.1 * jax.random.normal(kb, (2,), dtype=jnp.float32)

    feat_map = jax.random.normal(kx, (N, C, H, W), dtype=jnp.float32)
    # Standard-normal noise = the Normal(...).sample() randomness (reparameterized).
    noise = jax.random.normal(kn, (N, H, W), dtype=jnp.float32)

    z = gaussian_prior_forward(feat_map, weight, bias, noise, eps=1.0)
    z = jax.block_until_ready(z)
    assert z.shape == (N, 1, H, W) and z.dtype == jnp.float32

    # Plain-JAX reference (conv -> mean/softplus(sigma) -> reparameterized sample).
    h = jax.lax.conv_general_dilated(
        feat_map, weight, window_strides=(1, 1), padding="SAME",
        dimension_numbers=("NCHW", "OIHW", "NCHW"),
        precision=jax.lax.Precision.HIGHEST)
    h = h + bias.reshape(1, 2, 1, 1)
    mean_expected = h[:, 0:1]
    sigma_expected = jax.nn.softplus(h[:, 1:2])
    z_expected = mean_expected + (sigma_expected * 1.0 + 1e-5) * noise[:, None]
    assert jnp.allclose(z, z_expected, atol=2e-3, rtol=2e-3)

    print("KERNEL_OK")
</pallas_src>

<mosaic_0001>
module attributes {stable_mosaic.version = 11 : i64} {
  func.func @_gaussian_prior_kernel(%arg0: i32, %arg1: memref<72xf32, #tpu.memory_space<smem>>, %arg2: memref<2xf32, #tpu.memory_space<smem>>, %arg3: memref<1xf32, #tpu.memory_space<smem>>, %arg4: memref<1x4x16x16xf32, #tpu.memory_space<vmem>>, %arg5: memref<1x16x16xf32, #tpu.memory_space<vmem>>, %arg6: memref<1x16x16xf32, #tpu.memory_space<vmem>>, %arg7: memref<4x25x18xf32, #tpu.memory_space<vmem>>) attributes {dimension_semantics = [#tpu.dimension_semantics<parallel>], iteration_bounds = array<i64: 2>, scalar_prefetch = 3 : i64, scratch_operands = 1 : i64, tpu.core_type = #tpu.core_type<tc>, window_params = [{transform_indices = @transform_0, window_bounds = array<i64: 1, 4, 16, 16>}, {transform_indices = @transform_1, window_bounds = array<i64: 1, 16, 16>}, {transform_indices = @transform_2, window_bounds = array<i64: 1, 16, 16>}]} {
    %c0 = arith.constant 0 : index
    %0 = memref.load %arg3[%c0] : memref<1xf32, #tpu.memory_space<smem>>
    %cst = arith.constant 0.000000e+00 : f32
    %1 = vector.broadcast %cst : f32 to vector<4x25x18xf32>
    %c0_0 = arith.constant 0 : index
    %c0_1 = arith.constant 0 : index
    %c0_2 = arith.constant 0 : index
    %2 = vector.load %arg7[%c0_0, %c0_1, %c0_2] : memref<4x25x18xf32, #tpu.memory_space<vmem>>, vector<4x25x18xf32>
    tpu.vector_store %arg7[%c0_0, %c0_1, %c0_2], %1 {strides = array<i32>} : memref<4x25x18xf32, #tpu.memory_space<vmem>>, vector<4x25x18xf32>,
    %c0_3 = arith.constant 0 : index
    %3 = memref.load %arg1[%c0_3] : memref<72xf32, #tpu.memory_space<smem>>
    %c1 = arith.constant 1 : index
    %4 = memref.load %arg1[%c1] : memref<72xf32, #tpu.memory_space<smem>>
    %c2 = arith.constant 2 : index
    %5 = memref.load %arg1[%c2] : memref<72xf32, #tpu.memory_space<smem>>
    %c3 = arith.constant 3 : index
    %6 = memref.load %arg1[%c3] : memref<72xf32, #tpu.memory_space<smem>>
    %c4 = arith.constant 4 : index
    %7 = memref.load %arg1[%c4] : memref<72xf32, #tpu.memory_space<smem>>
    %c5 = arith.constant 5 : index
    %8 = memref.load %arg1[%c5] : memref<72xf32, #tpu.memory_space<smem>>
    %c6 = arith.constant 6 : index
    %9 = memref.load %arg1[%c6] : memref<72xf32, #tpu.memory_space<smem>>
    %c7 = arith.constant 7 : index
    %10 = memref.load %arg1[%c7] : memref<72xf32, #tpu.memory_space<smem>>
    %c8 = arith.constant 8 : index
    %11 = memref.load %arg1[%c8] : memref<72xf32, #tpu.memory_space<smem>>
    %c9 = arith.constant 9 : index
    %12 = memref.load %arg1[%c9] : memref<72xf32, #tpu.memory_space<smem>>
    %c10 = arith.constant 10 : index
    %13 = memref.load %arg1[%c10] : memref<72xf32, #tpu.memory_space<smem>>
    %c11 = arith.constant 11 : index
    %14 = memref.load %arg1[%c11] : memref<72xf32, #tpu.memory_space<smem>>
    %c12 = arith.constant 12 : index
    %15 = memref.load %arg1[%c12] : memref<72xf32, #tpu.memory_space<smem>>
    %c13 = arith.constant 13 : index
    %16 = memref.load %arg1[%c13] : memref<72xf32, #tpu.memory_space<smem>>
    %c14 = arith.constant 14 : index
    %17 = memref.load %arg1[%c14] : memref<72xf32, #tpu.memory_space<smem>>
    %c15 = arith.constant 15 : index
    %18 = memref.load %arg1[%c15] : memref<72xf32, #tpu.memory_space<smem>>
    %c16 = arith.constant 16 : index
    %19 = memref.load %arg1[%c16] : memref<72xf32, #tpu.memory_space<smem>>
    %c17 = arith.constant 17 : index
    %20 = memref.load %arg1[%c17] : memref<72xf32, #tpu.memory_space<smem>>
    %c18 = arith.constant 18 : index
    %21 = memref.load %arg1[%c18] : memref<72xf32, #tpu.memory_space<smem>>
    %c19 = arith.constant 19 : index
    %22 = memref.load %arg1[%c19] : memref<72xf32, #tpu.memory_space<smem>>
    %c20 = arith.constant 20 : index
    %23 = memref.load %arg1[%c20] : memref<72xf32, #tpu.memory_space<smem>>
    %c21 = arith.constant 21 : index
    %24 = memref.load %arg1[%c21] : memref<72xf32, #tpu.memory_space<smem>>
    %c22 = arith.constant 22 : index
    %25 = memref.load %arg1[%c22] : memref<72xf32, #tpu.memory_space<smem>>
    %c23 = arith.constant 23 : index
    %26 = memref.load %arg1[%c23] : memref<72xf32, #tpu.memory_space<smem>>
    %c24 = arith.constant 24 : index
    %27 = memref.load %arg1[%c24] : memref<72xf32, #tpu.memory_space<smem>>
    %c25 = arith.constant 25 : index
    %28 = memref.load %arg1[%c25] : memref<72xf32, #tpu.memory_space<smem>>
    %c26 = arith.constant 26 : index
    %29 = memref.load %arg1[%c26] : memref<72xf32, #tpu.memory_space<smem>>
    %c27 = arith.constant 27 : index
    %30 = memref.load %arg1[%c27] : memref<72xf32, #tpu.memory_space<smem>>
    %c28 = arith.constant 28 : index
    %31 = memref.load %arg1[%c28] : memref<72xf32, #tpu.memory_space<smem>>
    %c29 = arith.constant 29 : index
    %32 = memref.load %arg1[%c29] : memref<72xf32, #tpu.memory_space<smem>>
    %c30 = arith.constant 30 : index
    %33 = memref.load %arg1[%c30] : memref<72xf32, #tpu.memory_space<smem>>
    %c31 = arith.constant 31 : index
    %34 = memref.load %arg1[%c31] : memref<72xf32, #tpu.memory_space<smem>>
    %c32 = arith.constant 32 : index
    %35 = memref.load %arg1[%c32] : memref<72xf32, #tpu.memory_space<smem>>
    %c33 = arith.constant 33 : index
    %36 = memref.load %arg1[%c33] : memref<72xf32, #tpu.memory_space<smem>>
    %c34 = arith.constant 34 : index
    %37 = memref.load %arg1[%c34] : memref<72xf32, #tpu.memory_space<smem>>
    %c35 = arith.constant 35 : index
    %38 = memref.load %arg1[%c35] : memref<72xf32, #tpu.memory_space<smem>>
    %c36 = arith.constant 36 : index
    %39 = memref.load %arg1[%c36] : memref<72xf32, #tpu.memory_space<smem>>
    %c37 = arith.constant 37 : index
    %40 = memref.load %arg1[%c37] : memref<72xf32, #tpu.memory_space<smem>>
    %c38 = arith.constant 38 : index
    %41 = memref.load %arg1[%c38] : memref<72xf32, #tpu.memory_space<smem>>
    %c39 = arith.constant 39 : index
    %42 = memref.load %arg1[%c39] : memref<72xf32, #tpu.memory_space<smem>>
    %c40 = arith.constant 40 : index
    %43 = memref.load %arg1[%c40] : memref<72xf32, #tpu.memory_space<smem>>
    %c41 = arith.constant 41 : index
    %44 = memref.load %arg1[%c41] : memref<72xf32, #tpu.memory_space<smem>>
    %c42 = arith.constant 42 : index
    %45 = memref.load %arg1[%c42] : memref<72xf32, #tpu.memory_space<smem>>
    %c43 = arith.constant 43 : index
    %46 = memref.load %arg1[%c43] : memref<72xf32, #tpu.memory_space<smem>>
    %c44 = arith.constant 44 : index
    %47 = memref.load %arg1[%c44] : memref<72xf32, #tpu.memory_space<smem>>
    %c45 = arith.constant 45 : index
    %48 = memref.load %arg1[%c45] : memref<72xf32, #tpu.memory_space<smem>>
    %c46 = arith.constant 46 : index
    %49 = memref.load %arg1[%c46] : memref<72xf32, #tpu.memory_space<smem>>
    %c47 = arith.constant 47 : index
    %50 = memref.load %arg1[%c47] : memref<72xf32, #tpu.memory_space<smem>>
    %c48 = arith.constant 48 : index
    %51 = memref.load %arg1[%c48] : memref<72xf32, #tpu.memory_space<smem>>
    %c49 = arith.constant 49 : index
    %52 = memref.load %arg1[%c49] : memref<72xf32, #tpu.memory_space<smem>>
    %c50 = arith.constant 50 : index
    %53 = memref.load %arg1[%c50] : memref<72xf32, #tpu.memory_space<smem>>
    %c51 = arith.constant 51 : index
    %54 = memref.load %arg1[%c51] : memref<72xf32, #tpu.memory_space<smem>>
    %c52 = arith.constant 52 : index
    %55 = memref.load %arg1[%c52] : memref<72xf32, #tpu.memory_space<smem>>
    %c53 = arith.constant 53 : index
    %56 = memref.load %arg1[%c53] : memref<72xf32, #tpu.memory_space<smem>>
    %c54 = arith.constant 54 : index
    %57 = memref.load %arg1[%c54] : memref<72xf32, #tpu.memory_space<smem>>
    %c55 = arith.constant 55 : index
    %58 = memref.load %arg1[%c55] : memref<72xf32, #tpu.memory_space<smem>>
    %c56 = arith.constant 56 : index
    %59 = memref.load %arg1[%c56] : memref<72xf32, #tpu.memory_space<smem>>
    %c57 = arith.constant 57 : index
    %60 = memref.load %arg1[%c57] : memref<72xf32, #tpu.memory_space<smem>>
    %c58 = arith.constant 58 : index
    %61 = memref.load %arg1[%c58] : memref<72xf32, #tpu.memory_space<smem>>
    %c59 = arith.constant 59 : index
    %62 = memref.load %arg1[%c59] : memref<72xf32, #tpu.memory_space<smem>>
    %c60 = arith.constant 60 : index
    %63 = memref.load %arg1[%c60] : memref<72xf32, #tpu.memory_space<smem>>
    %c61 = arith.constant 61 : index
    %64 = memref.load %arg1[%c61] : memref<72xf32, #tpu.memory_space<smem>>
    %c62 = arith.constant 62 : index
    %65 = memref.load %arg1[%c62] : memref<72xf32, #tpu.memory_space<smem>>
    %c63 = arith.constant 63 : index
    %66 = memref.load %arg1[%c63] : memref<72xf32, #tpu.memory_space<smem>>
    %c64 = arith.constant 64 : index
    %67 = memref.load %arg1[%c64] : memref<72xf32, #tpu.memory_space<smem>>
    %c65 = arith.constant 65 : index
    %68 = memref.load %arg1[%c65] : memref<72xf32, #tpu.memory_space<smem>>
    %c66 = arith.constant 66 : index
    %69 = memref.load %arg1[%c66] : memref<72xf32, #tpu.memory_space<smem>>
    %c67 = arith.constant 67 : index
    %70 = memref.load %arg1[%c67] : memref<72xf32, #tpu.memory_space<smem>>
    %c68 = arith.constant 68 : index
    %71 = memref.load %arg1[%c68] : memref<72xf32, #tpu.memory_space<smem>>
    %c69 = arith.constant 69 : index
    %72 = memref.load %arg1[%c69] : memref<72xf32, #tpu.memory_space<smem>>
    %c70 = arith.constant 70 : index
    %73 = memref.load %arg1[%c70] : memref<72xf32, #tpu.memory_space<smem>>
    %c71 = arith.constant 71 : index
    %74 = memref.load %arg1[%c71] : memref<72xf32, #tpu.memory_space<smem>>
    %c0_4 = arith.constant 0 : index
    %75 = memref.load %arg2[%c0_4] : memref<2xf32, #tpu.memory_space<smem>>
    %76 = vector.broadcast %75 : f32 to vector<16x16xf32>
    %c1_5 = arith.constant 1 : index
    %77 = memref.load %arg2[%c1_5] : memref<2xf32, #tpu.memory_space<smem>>
    %78 = vector.broadcast %77 : f32 to vector<16x16xf32>
    %c0_6 = arith.constant 0 : index
    %c0_7 = arith.constant 0 : index
    %c0_8 = arith.constant 0 : index
    %c0_9 = arith.constant 0 : index
    %79 = vector.load %arg4[%c0_6, %c0_7, %c0_8, %c0_9] : memref<1x4x16x16xf32, #tpu.memory_space<vmem>>, vector<1x4x16x16xf32>
    %80 = vector.shape_cast %79 : vector<1x4x16x16xf32> to vector<4x16x16xf32>
    %c0_10 = arith.constant 0 : index
    %c8_11 = arith.constant 8 : index
    %c1_12 = arith.constant 1 : index
    %81 = vector.load %arg7[%c0_10, %c8_11, %c1_12] : memref<4x25x18xf32, #tpu.memory_space<vmem>>, vector<4x16x16xf32>
    tpu.vector_store %arg7[%c0_10, %c8_11, %c1_12], %80 {strides = array<i32>} : memref<4x25x18xf32, #tpu.memory_space<vmem>>, vector<4x16x16xf32>,
    %c0_13 = arith.constant 0 : index
    %c7_14 = arith.constant 7 : index
    %c0_15 = arith.constant 0 : index
    %82 = vector.load %arg7[%c0_13, %c7_14, %c0_15] : memref<4x25x18xf32, #tpu.memory_space<vmem>>, vector<1x16x16xf32>
    %83 = vector.shape_cast %82 : vector<1x16x16xf32> to vector<16x16xf32>
    %84 = vector.broadcast %3 : f32 to vector<16x16xf32>
    %85 = arith.mulf %84, %83 : vector<16x16xf32>
    %86 = arith.addf %76, %85 : vector<16x16xf32>
    %87 = vector.broadcast %39 : f32 to vector<16x16xf32>
    %88 = arith.mulf %87, %83 : vector<16x16xf32>
    %89 = arith.addf %78, %88 : vector<16x16xf32>
    %c0_16 = arith.constant 0 : index
    %c7_17 = arith.constant 7 : index
    %c1_18 = arith.constant 1 : index
    %90 = vector.load %arg7[%c0_16, %c7_17, %c1_18] : memref<4x25x18xf32, #tpu.memory_space<vmem>>, vector<1x16x16xf32>
    %91 = vector.shape_cast %90 : vector<1x16x16xf32> to vector<16x16xf32>
    %92 = vector.broadcast %4 : f32 to vector<16x16xf32>
    %93 = arith.mulf %92, %91 : vector<16x16xf32>
    %94 = arith.addf %86, %93 : vector<16x16xf32>
    %95 = vector.broadcast %40 : f32 to vector<16x16xf32>
    %96 = arith.mulf %95, %91 : vector<16x16xf32>
    %97 = arith.addf %89, %96 : vector<16x16xf32>
    %c0_19 = arith.constant 0 : index
    %c7_20 = arith.constant 7 : index
    %c2_21 = arith.constant 2 : index
    %98 = vector.load %arg7[%c0_19, %c7_20, %c2_21] : memref<4x25x18xf32, #tpu.memory_space<vmem>>, vector<1x16x16xf32>
    %99 = vector.shape_cast %98 : vector<1x16x16xf32> to vector<16x16xf32>
    %100 = vector.broadcast %5 : f32 to vector<16x16xf32>
    %101 = arith.mulf %100, %99 : vector<16x16xf32>
    %102 = arith.addf %94, %101 : vector<16x16xf32>
    %103 = vector.broadcast %41 : f32 to vector<16x16xf32>
    %104 = arith.mulf %103, %99 : vector<16x16xf32>
    %105 = arith.addf %97, %104 : vector<16x16xf32>
    %c0_22 = arith.constant 0 : index
    %c8_23 = arith.constant 8 : index
    %c0_24 = arith.constant 0 : index
    %106 = vector.load %arg7[%c0_22, %c8_23, %c0_24] : memref<4x25x18xf32, #tpu.memory_space<vmem>>, vector<1x16x16xf32>
    %107 = vector.shape_cast %106 : vector<1x16x16xf32> to vector<16x16xf32>
    %108 = vector.broadcast %6 : f32 to vector<16x16xf32>
    %109 = arith.mulf %108, %107 : vector<16x16xf32>
    %110 = arith.addf %102, %109 : vector<16x16xf32>
    %111 = vector.broadcast %42 : f32 to vector<16x16xf32>
    %112 = arith.mulf %111, %107 : vector<16x16xf32>
    %113 = arith.addf %105, %112 : vector<16x16xf32>
    %c0_25 = arith.constant 0 : index
    %c8_26 = arith.constant 8 : index
    %c1_27 = arith.constant 1 : index
    %114 = vector.load %arg7[%c0_25, %c8_26, %c1_27] : memref<4x25x18xf32, #tpu.memory_space<vmem>>, vector<1x16x16xf32>
    %115 = vector.shape_cast %114 : vector<1x16x16xf32> to vector<16x16xf32>
    %116 = vector.broadcast %7 : f32 to vector<16x16xf32>
    %117 = arith.mulf %116, %115 : vector<16x16xf32>
    %118 = arith.addf %110, %117 : vector<16x16xf32>
    %119 = vector.broadcast %43 : f32 to vector<16x16xf32>
    %120 = arith.mulf %119, %115 : vector<16x16xf32>
    %121 = arith.addf %113, %120 : vector<16x16xf32>
    %c0_28 = arith.constant 0 : index
    %c8_29 = arith.constant 8 : index
    %c2_30 = arith.constant 2 : index
    %122 = vector.load %arg7[%c0_28, %c8_29, %c2_30] : memref<4x25x18xf32, #tpu.memory_space<vmem>>, vector<1x16x16xf32>
    %123 = vector.shape_cast %122 : vector<1x16x16xf32> to vector<16x16xf32>
    %124 = vector.broadcast %8 : f32 to vector<16x16xf32>
    %125 = arith.mulf %124, %123 : vector<16x16xf32>
    %126 = arith.addf %118, %125 : vector<16x16xf32>
    %127 = vector.broadcast %44 : f32 to vector<16x16xf32>
    %128 = arith.mulf %127, %123 : vector<16x16xf32>
    %129 = arith.addf %121, %128 : vector<16x16xf32>
    %c0_31 = arith.constant 0 : index
    %c9_32 = arith.constant 9 : index
    %c0_33 = arith.constant 0 : index
    %130 = vector.load %arg7[%c0_31, %c9_32, %c0_33] : memref<4x25x18xf32, #tpu.memory_space<vmem>>, vector<1x16x16xf32>
    %131 = vector.shape_cast %130 : vector<1x16x16xf32> to vector<16x16xf32>
    %132 = vector.broadcast %9 : f32 to vector<16x16xf32>
    %133 = arith.mulf %132, %131 : vector<16x16xf32>
    %134 = arith.addf %126, %133 : vector<16x16xf32>
    %135 = vector.broadcast %45 : f32 to vector<16x16xf32>
    %136 = arith.mulf %135, %131 : vector<16x16xf32>
    %137 = arith.addf %129, %136 : vector<16x16xf32>
    %c0_34 = arith.constant 0 : index
    %c9_35 = arith.constant 9 : index
    %c1_36 = arith.constant 1 : index
    %138 = vector.load %arg7[%c0_34, %c9_35, %c1_36] : memref<4x25x18xf32, #tpu.memory_space<vmem>>, vector<1x16x16xf32>
    %139 = vector.shape_cast %138 : vector<1x16x16xf32> to vector<16x16xf32>
    %140 = vector.broadcast %10 : f32 to vector<16x16xf32>
    %141 = arith.mulf %140, %139 : vector<16x16xf32>
    %142 = arith.addf %134, %141 : vector<16x16xf32>
    %143 = vector.broadcast %46 : f32 to vector<16x16xf32>
    %144 = arith.mulf %143, %139 : vector<16x16xf32>
    %145 = arith.addf %137, %144 : vector<16x16xf32>
    %c0_37 = arith.constant 0 : index
    %c9_38 = arith.constant 9 : index
    %c2_39 = arith.constant 2 : index
    %146 = vector.load %arg7[%c0_37, %c9_38, %c2_39] : memref<4x25x18xf32, #tpu.memory_space<vmem>>, vector<1x16x16xf32>
    %147 = vector.shape_cast %146 : vector<1x16x16xf32> to vector<16x16xf32>
    %148 = vector.broadcast %11 : f32 to vector<16x16xf32>
    %149 = arith.mulf %148, %147 : vector<16x16xf32>
    %150 = arith.addf %142, %149 : vector<16x16xf32>
    %151 = vector.broadcast %47 : f32 to vector<16x16xf32>
    %152 = arith.mulf %151, %147 : vector<16x16xf32>
    %153 = arith.addf %145, %152 : vector<16x16xf32>
    %c1_40 = arith.constant 1 : index
    %c7_41 = arith.constant 7 : index
    %c0_42 = arith.constant 0 : index
    %154 = vector.load %arg7[%c1_40, %c7_41, %c0_42] : memref<4x25x18xf32, #tpu.memory_space<vmem>>, vector<1x16x16xf32>
    %155 = vector.shape_cast %154 : vector<1x16x16xf32> to vector<16x16xf32>
    %156 = vector.broadcast %12 : f32 to vector<16x16xf32>
    %157 = arith.mulf %156, %155 : vector<16x16xf32>
    %158 = arith.addf %150, %157 : vector<16x16xf32>
    %159 = vector.broadcast %48 : f32 to vector<16x16xf32>
    %160 = arith.mulf %159, %155 : vector<16x16xf32>
    %161 = arith.addf %153, %160 : vector<16x16xf32>
    %c1_43 = arith.constant 1 : index
    %c7_44 = arith.constant 7 : index
    %c1_45 = arith.constant 1 : index
    %162 = vector.load %arg7[%c1_43, %c7_44, %c1_45] : memref<4x25x18xf32, #tpu.memory_space<vmem>>, vector<1x16x16xf32>
    %163 = vector.shape_cast %162 : vector<1x16x16xf32> to vector<16x16xf32>
    %164 = vector.broadcast %13 : f32 to vector<16x16xf32>
    %165 = arith.mulf %164, %163 : vector<16x16xf32>
    %166 = arith.addf %158, %165 : vector<16x16xf32>
    %167 = vector.broadcast %49 : f32 to vector<16x16xf32>
    %168 = arith.mulf %167, %163 : vector<16x16xf32>
    %169 = arith.addf %161, %168 : vector<16x16xf32>
    %c1_46 = arith.constant 1 : index
    %c7_47 = arith.constant 7 : index
    %c2_48 = arith.constant 2 : index
    %170 = vector.load %arg7[%c1_46, %c7_47, %c2_48] : memref<4x25x18xf32, #tpu.memory_space<vmem>>, vector<1x16x16xf32>
    %171 = vector.shape_cast %170 : vector<1x16x16xf32> to vector<16x16xf32>
    %172 = vector.broadcast %14 : f32 to vector<16x16xf32>
    %173 = arith.mulf %172, %171 : vector<16x16xf32>
    %174 = arith.addf %166, %173 : vector<16x16xf32>
    %175 = vector.broadcast %50 : f32 to vector<16x16xf32>
    %176 = arith.mulf %175, %171 : vector<16x16xf32>
    %177 = arith.addf %169, %176 : vector<16x16xf32>
    %c1_49 = arith.constant 1 : index
    %c8_50 = arith.constant 8 : index
    %c0_51 = arith.constant 0 : index
    %178 = vector.load %arg7[%c1_49, %c8_50, %c0_51] : memref<4x25x18xf32, #tpu.memory_space<vmem>>, vector<1x16x16xf32>
    %179 = vector.shape_cast %178 : vector<1x16x16xf32> to vector<16x16xf32>
    %180 = vector.broadcast %15 : f32 to vector<16x16xf32>
    %181 = arith.mulf %180, %179 : vector<16x16xf32>
    %182 = arith.addf %174, %181 : vector<16x16xf32>
    %183 = vector.broadcast %51 : f32 to vector<16x16xf32>
    %184 = arith.mulf %183, %179 : vector<16x16xf32>
    %185 = arith.addf %177, %184 : vector<16x16xf32>
    %c1_52 = arith.constant 1 : index
    %c8_53 = arith.constant 8 : index
    %c1_54 = arith.constant 1 : index
    %186 = vector.load %arg7[%c1_52, %c8_53, %c1_54] : memref<4x25x18xf32, #tpu.memory_space<vmem>>, vector<1x16x16xf32>
    %187 = vector.shape_cast %186 : vector<1x16x16xf32> to vector<16x16xf32>
    %188 = vector.broadcast %16 : f32 to vector<16x16xf32>
    %189 = arith.mulf %188, %187 : vector<16x16xf32>
    %190 = arith.addf %182, %189 : vector<16x16xf32>
    %191 = vector.broadcast %52 : f32 to vector<16x16xf32>
    %192 = arith.mulf %191, %187 : vector<16x16xf32>
    %193 = arith.addf %185, %192 : vector<16x16xf32>
    %c1_55 = arith.constant 1 : index
    %c8_56 = arith.constant 8 : index
    %c2_57 = arith.constant 2 : index
    %194 = vector.load %arg7[%c1_55, %c8_56, %c2_57] : memref<4x25x18xf32, #tpu.memory_space<vmem>>, vector<1x16x16xf32>
    %195 = vector.shape_cast %194 : vector<1x16x16xf32> to vector<16x16xf32>
    %196 = vector.broadcast %17 : f32 to vector<16x16xf32>
    %197 = arith.mulf %196, %195 : vector<16x16xf32>
    %198 = arith.addf %190, %197 : vector<16x16xf32>
    %199 = vector.broadcast %53 : f32 to vector<16x16xf32>
    %200 = arith.mulf %199, %195 : vector<16x16xf32>
    %201 = arith.addf %193, %200 : vector<16x16xf32>
    %c1_58 = arith.constant 1 : index
    %c9_59 = arith.constant 9 : index
    %c0_60 = arith.constant 0 : index
    %202 = vector.load %arg7[%c1_58, %c9_59, %c0_60] : memref<4x25x18xf32, #tpu.memory_space<vmem>>, vector<1x16x16xf32>
    %203 = vector.shape_cast %202 : vector<1x16x16xf32> to vector<16x16xf32>
    %204 = vector.broadcast %18 : f32 to vector<16x16xf32>
    %205 = arith.mulf %204, %203 : vector<16x16xf32>
    %206 = arith.addf %198, %205 : vector<16x16xf32>
    %207 = vector.broadcast %54 : f32 to vector<16x16xf32>
    %208 = arith.mulf %207, %203 : vector<16x16xf32>
    %209 = arith.addf %201, %208 : vector<16x16xf32>
    %c1_61 = arith.constant 1 : index
    %c9_62 = arith.constant 9 : index
    %c1_63 = arith.constant 1 : index
    %210 = vector.load %arg7[%c1_61, %c9_62, %c1_63] : memref<4x25x18xf32, #tpu.memory_space<vmem>>, vector<1x16x16xf32>
    %211 = vector.shape_cast %210 : vector<1x16x16xf32> to vector<16x16xf32>
    %212 = vector.broadcast %19 : f32 to vector<16x16xf32>
    %213 = arith.mulf %212, %211 : vector<16x16xf32>
    %214 = arith.addf %206, %213 : vector<16x16xf32>
    %215 = vector.broadcast %55 : f32 to vector<16x16xf32>
    %216 = arith.mulf %215, %211 : vector<16x16xf32>
    %217 = arith.addf %209, %216 : vector<16x16xf32>
    %c1_64 = arith.constant 1 : index
    %c9_65 = arith.constant 9 : index
    %c2_66 = arith.constant 2 : index
    %218 = vector.load %arg7[%c1_64, %c9_65, %c2_66] : memref<4x25x18xf32, #tpu.memory_space<vmem>>, vector<1x16x16xf32>
    %219 = vector.shape_cast %218 : vector<1x16x16xf32> to vector<16x16xf32>
    %220 = vector.broadcast %20 : f32 to vector<16x16xf32>
    %221 = arith.mulf %220, %219 : vector<16x16xf32>
    %222 = arith.addf %214, %221 : vector<16x16xf32>
    %223 = vector.broadcast %56 : f32 to vector<16x16xf32>
    %224 = arith.mulf %223, %219 : vector<16x16xf32>
    %225 = arith.addf %217, %224 : vector<16x16xf32>
    %c2_67 = arith.constant 2 : index
    %c7_68 = arith.constant 7 : index
    %c0_69 = arith.constant 0 : index
    %226 = vector.load %arg7[%c2_67, %c7_68, %c0_69] : memref<4x25x18xf32, #tpu.memory_space<vmem>>, vector<1x16x16xf32>
    %227 = vector.shape_cast %226 : vector<1x16x16xf32> to vector<16x16xf32>
    %228 = vector.broadcast %21 : f32 to vector<16x16xf32>
    %229 = arith.mulf %228, %227 : vector<16x16xf32>
    %230 = arith.addf %222, %229 : vector<16x16xf32>
    %231 = vector.broadcast %57 : f32 to vector<16x16xf32>
    %232 = arith.mulf %231, %227 : vector<16x16xf32>
    %233 = arith.addf %225, %232 : vector<16x16xf32>
    %c2_70 = arith.constant 2 : index
    %c7_71 = arith.constant 7 : index
    %c1_72 = arith.constant 1 : index
    %234 = vector.load %arg7[%c2_70, %c7_71, %c1_72] : memref<4x25x18xf32, #tpu.memory_space<vmem>>, vector<1x16x16xf32>
    %235 = vector.shape_cast %234 : vector<1x16x16xf32> to vector<16x16xf32>
    %236 = vector.broadcast %22 : f32 to vector<16x16xf32>
    %237 = arith.mulf %236, %235 : vector<16x16xf32>
    %238 = arith.addf %230, %237 : vector<16x16xf32>
    %239 = vector.broadcast %58 : f32 to vector<16x16xf32>
    %240 = arith.mulf %239, %235 : vector<16x16xf32>
    %241 = arith.addf %233, %240 : vector<16x16xf32>
    %c2_73 = arith.constant 2 : index
    %c7_74 = arith.constant 7 : index
    %c2_75 = arith.constant 2 : index
    %242 = vector.load %arg7[%c2_73, %c7_74, %c2_75] : memref<4x25x18xf32, #tpu.memory_space<vmem>>, vector<1x16x16xf32>
    %243 = vector.shape_cast %242 : vector<1x16x16xf32> to vector<16x16xf32>
    %244 = vector.broadcast %23 : f32 to vector<16x16xf32>
    %245 = arith.mulf %244, %243 : vector<16x16xf32>
    %246 = arith.addf %238, %245 : vector<16x16xf32>
    %247 = vector.broadcast %59 : f32 to vector<16x16xf32>
    %248 = arith.mulf %247, %243 : vector<16x16xf32>
    %249 = arith.addf %241, %248 : vector<16x16xf32>
    %c2_76 = arith.constant 2 : index
    %c8_77 = arith.constant 8 : index
    %c0_78 = arith.constant 0 : index
    %250 = vector.load %arg7[%c2_76, %c8_77, %c0_78] : memref<4x25x18xf32, #tpu.memory_space<vmem>>, vector<1x16x16xf32>
    %251 = vector.shape_cast %250 : vector<1x16x16xf32> to vector<16x16xf32>
    %252 = vector.broadcast %24 : f32 to vector<16x16xf32>
    %253 = arith.mulf %252, %251 : vector<16x16xf32>
    %254 = arith.addf %246, %253 : vector<16x16xf32>
    %255 = vector.broadcast %60 : f32 to vector<16x16xf32>
    %256 = arith.mulf %255, %251 : vector<16x16xf32>
    %257 = arith.addf %249, %256 : vector<16x16xf32>
    %c2_79 = arith.constant 2 : index
    %c8_80 = arith.constant 8 : index
    %c1_81 = arith.constant 1 : index
    %258 = vector.load %arg7[%c2_79, %c8_80, %c1_81] : memref<4x25x18xf32, #tpu.memory_space<vmem>>, vector<1x16x16xf32>
    %259 = vector.shape_cast %258 : vector<1x16x16xf32> to vector<16x16xf32>
    %260 = vector.broadcast %25 : f32 to vector<16x16xf32>
    %261 = arith.mulf %260, %259 : vector<16x16xf32>
    %262 = arith.addf %254, %261 : vector<16x16xf32>
    %263 = vector.broadcast %61 : f32 to vector<16x16xf32>
    %264 = arith.mulf %263, %259 : vector<16x16xf32>
    %265 = arith.addf %257, %264 : vector<16x16xf32>
    %c2_82 = arith.constant 2 : index
    %c8_83 = arith.constant 8 : index
    %c2_84 = arith.constant 2 : index
    %266 = vector.load %arg7[%c2_82, %c8_83, %c2_84] : memref<4x25x18xf32, #tpu.memory_space<vmem>>, vector<1x16x16xf32>
    %267 = vector.shape_cast %266 : vector<1x16x16xf32> to vector<16x16xf32>
    %268 = vector.broadcast %26 : f32 to vector<16x16xf32>
    %269 = arith.mulf %268, %267 : vector<16x16xf32>
    %270 = arith.addf %262, %269 : vector<16x16xf32>
    %271 = vector.broadcast %62 : f32 to vector<16x16xf32>
    %272 = arith.mulf %271, %267 : vector<16x16xf32>
    %273 = arith.addf %265, %272 : vector<16x16xf32>
    %c2_85 = arith.constant 2 : index
    %c9_86 = arith.constant 9 : index
    %c0_87 = arith.constant 0 : index
    %274 = vector.load %arg7[%c2_85, %c9_86, %c0_87] : memref<4x25x18xf32, #tpu.memory_space<vmem>>, vector<1x16x16xf32>
    %275 = vector.shape_cast %274 : vector<1x16x16xf32> to vector<16x16xf32>
    %276 = vector.broadcast %27 : f32 to vector<16x16xf32>
    %277 = arith.mulf %276, %275 : vector<16x16xf32>
    %278 = arith.addf %270, %277 : vector<16x16xf32>
    %279 = vector.broadcast %63 : f32 to vector<16x16xf32>
    %280 = arith.mulf %279, %275 : vector<16x16xf32>
    %281 = arith.addf %273, %280 : vector<16x16xf32>
    %c2_88 = arith.constant 2 : index
    %c9_89 = arith.constant 9 : index
    %c1_90 = arith.constant 1 : index
    %282 = vector.load %arg7[%c2_88, %c9_89, %c1_90] : memref<4x25x18xf32, #tpu.memory_space<vmem>>, vector<1x16x16xf32>
    %283 = vector.shape_cast %282 : vector<1x16x16xf32> to vector<16x16xf32>
    %284 = vector.broadcast %28 : f32 to vector<16x16xf32>
    %285 = arith.mulf %284, %283 : vector<16x16xf32>
    %286 = arith.addf %278, %285 : vector<16x16xf32>
    %287 = vector.broadcast %64 : f32 to vector<16x16xf32>
    %288 = arith.mulf %287, %283 : vector<16x16xf32>
    %289 = arith.addf %281, %288 : vector<16x16xf32>
    %c2_91 = arith.constant 2 : index
    %c9_92 = arith.constant 9 : index
    %c2_93 = arith.constant 2 : index
    %290 = vector.load %arg7[%c2_91, %c9_92, %c2_93] : memref<4x25x18xf32, #tpu.memory_space<vmem>>, vector<1x16x16xf32>
    %291 = vector.shape_cast %290 : vector<1x16x16xf32> to vector<16x16xf32>
    %292 = vector.broadcast %29 : f32 to vector<16x16xf32>
    %293 = arith.mulf %292, %291 : vector<16x16xf32>
    %294 = arith.addf %286, %293 : vector<16x16xf32>
    %295 = vector.broadcast %65 : f32 to vector<16x16xf32>
    %296 = arith.mulf %295, %291 : vector<16x16xf32>
    %297 = arith.addf %289, %296 : vector<16x16xf32>
    %c3_94 = arith.constant 3 : index
    %c7_95 = arith.constant 7 : index
    %c0_96 = arith.constant 0 : index
    %298 = vector.load %arg7[%c3_94, %c7_95, %c0_96] : memref<4x25x18xf32, #tpu.memory_space<vmem>>, vector<1x16x16xf32>
    %299 = vector.shape_cast %298 : vector<1x16x16xf32> to vector<16x16xf32>
    %300 = vector.broadcast %30 : f32 to vector<16x16xf32>
    %301 = arith.mulf %300, %299 : vector<16x16xf32>
    %302 = arith.addf %294, %301 : vector<16x16xf32>
    %303 = vector.broadcast %66 : f32 to vector<16x16xf32>
    %304 = arith.mulf %303, %299 : vector<16x16xf32>
    %305 = arith.addf %297, %304 : vector<16x16xf32>
    %c3_97 = arith.constant 3 : index
    %c7_98 = arith.constant 7 : index
    %c1_99 = arith.constant 1 : index
    %306 = vector.load %arg7[%c3_97, %c7_98, %c1_99] : memref<4x25x18xf32, #tpu.memory_space<vmem>>, vector<1x16x16xf32>
    %307 = vector.shape_cast %306 : vector<1x16x16xf32> to vector<16x16xf32>
    %308 = vector.broadcast %31 : f32 to vector<16x16xf32>
    %309 = arith.mulf %308, %307 : vector<16x16xf32>
    %310 = arith.addf %302, %309 : vector<16x16xf32>
    %311 = vector.broadcast %67 : f32 to vector<16x16xf32>
    %312 = arith.mulf %311, %307 : vector<16x16xf32>
    %313 = arith.addf %305, %312 : vector<16x16xf32>
    %c3_100 = arith.constant 3 : index
    %c7_101 = arith.constant 7 : index
    %c2_102 = arith.constant 2 : index
    %314 = vector.load %arg7[%c3_100, %c7_101, %c2_102] : memref<4x25x18xf32, #tpu.memory_space<vmem>>, vector<1x16x16xf32>
    %315 = vector.shape_cast %314 : vector<1x16x16xf32> to vector<16x16xf32>
    %316 = vector.broadcast %32 : f32 to vector<16x16xf32>
    %317 = arith.mulf %316, %315 : vector<16x16xf32>
    %318 = arith.addf %310, %317 : vector<16x16xf32>
    %319 = vector.broadcast %68 : f32 to vector<16x16xf32>
    %320 = arith.mulf %319, %315 : vector<16x16xf32>
    %321 = arith.addf %313, %320 : vector<16x16xf32>
    %c3_103 = arith.constant 3 : index
    %c8_104 = arith.constant 8 : index
    %c0_105 = arith.constant 0 : index
    %322 = vector.load %arg7[%c3_103, %c8_104, %c0_105] : memref<4x25x18xf32, #tpu.memory_space<vmem>>, vector<1x16x16xf32>
    %323 = vector.shape_cast %322 : vector<1x16x16xf32> to vector<16x16xf32>
    %324 = vector.broadcast %33 : f32 to vector<16x16xf32>
    %325 = arith.mulf %324, %323 : vector<16x16xf32>
    %326 = arith.addf %318, %325 : vector<16x16xf32>
    %327 = vector.broadcast %69 : f32 to vector<16x16xf32>
    %328 = arith.mulf %327, %323 : vector<16x16xf32>
    %329 = arith.addf %321, %328 : vector<16x16xf32>
    %c3_106 = arith.constant 3 : index
    %c8_107 = arith.constant 8 : index
    %c1_108 = arith.constant 1 : index
    %330 = vector.load %arg7[%c3_106, %c8_107, %c1_108] : memref<4x25x18xf32, #tpu.memory_space<vmem>>, vector<1x16x16xf32>
    %331 = vector.shape_cast %330 : vector<1x16x16xf32> to vector<16x16xf32>
    %332 = vector.broadcast %34 : f32 to vector<16x16xf32>
    %333 = arith.mulf %332, %331 : vector<16x16xf32>
    %334 = arith.addf %326, %333 : vector<16x16xf32>
    %335 = vector.broadcast %70 : f32 to vector<16x16xf32>
    %336 = arith.mulf %335, %331 : vector<16x16xf32>
    %337 = arith.addf %329, %336 : vector<16x16xf32>
    %c3_109 = arith.constant 3 : index
    %c8_110 = arith.constant 8 : index
    %c2_111 = arith.constant 2 : index
    %338 = vector.load %arg7[%c3_109, %c8_110, %c2_111] : memref<4x25x18xf32, #tpu.memory_space<vmem>>, vector<1x16x16xf32>
    %339 = vector.shape_cast %338 : vector<1x16x16xf32> to vector<16x16xf32>
    %340 = vector.broadcast %35 : f32 to vector<16x16xf32>
    %341 = arith.mulf %340, %339 : vector<16x16xf32>
    %342 = arith.addf %334, %341 : vector<16x16xf32>
    %343 = vector.broadcast %71 : f32 to vector<16x16xf32>
    %344 = arith.mulf %343, %339 : vector<16x16xf32>
    %345 = arith.addf %337, %344 : vector<16x16xf32>
    %c3_112 = arith.constant 3 : index
    %c9_113 = arith.constant 9 : index
    %c0_114 = arith.constant 0 : index
    %346 = vector.load %arg7[%c3_112, %c9_113, %c0_114] : memref<4x25x18xf32, #tpu.memory_space<vmem>>, vector<1x16x16xf32>
    %347 = vector.shape_cast %346 : vector<1x16x16xf32> to vector<16x16xf32>
    %348 = vector.broadcast %36 : f32 to vector<16x16xf32>
    %349 = arith.mulf %348, %347 : vector<16x16xf32>
    %350 = arith.addf %342, %349 : vector<16x16xf32>
    %351 = vector.broadcast %72 : f32 to vector<16x16xf32>
    %352 = arith.mulf %351, %347 : vector<16x16xf32>
    %353 = arith.addf %345, %352 : vector<16x16xf32>
    %c3_115 = arith.constant 3 : index
    %c9_116 = arith.constant 9 : index
    %c1_117 = arith.constant 1 : index
    %354 = vector.load %arg7[%c3_115, %c9_116, %c1_117] : memref<4x25x18xf32, #tpu.memory_space<vmem>>, vector<1x16x16xf32>
    %355 = vector.shape_cast %354 : vector<1x16x16xf32> to vector<16x16xf32>
    %356 = vector.broadcast %37 : f32 to vector<16x16xf32>
    %357 = arith.mulf %356, %355 : vector<16x16xf32>
    %358 = arith.addf %350, %357 : vector<16x16xf32>
    %359 = vector.broadcast %73 : f32 to vector<16x16xf32>
    %360 = arith.mulf %359, %355 : vector<16x16xf32>
    %361 = arith.addf %353, %360 : vector<16x16xf32>
    %c3_118 = arith.constant 3 : index
    %c9_119 = arith.constant 9 : index
    %c2_120 = arith.constant 2 : index
    %362 = vector.load %arg7[%c3_118, %c9_119, %c2_120] : memref<4x25x18xf32, #tpu.memory_space<vmem>>, vector<1x16x16xf32>
    %363 = vector.shape_cast %362 : vector<1x16x16xf32> to vector<16x16xf32>
    %364 = vector.broadcast %38 : f32 to vector<16x16xf32>
    %365 = arith.mulf %364, %363 : vector<16x16xf32>
    %366 = arith.addf %358, %365 : vector<16x16xf32>
    %367 = vector.broadcast %74 : f32 to vector<16x16xf32>
    %368 = arith.mulf %367, %363 : vector<16x16xf32>
    %369 = arith.addf %361, %368 : vector<16x16xf32>
    %cst_121 = arith.constant 0.000000e+00 : f32
    %370 = vector.broadcast %cst_121 : f32 to vector<16x16xf32>
    %371 = arith.maximumf %369, %370 : vector<16x16xf32>
    %372 = vector.broadcast %cst_121 : f32 to vector<16x16xf32>
    %373 = arith.subf %369, %372 : vector<16x16xf32>
    %374 = arith.cmpf one, %373, %373 : vector<16x16xf32>
    %375 = vector.broadcast %cst_121 : f32 to vector<16x16xf32>
    %376 = arith.addf %369, %375 : vector<16x16xf32>
    %377 = math.absf %373 : vector<16x16xf32>
    %cst_122 = arith.constant 0.000000e+00 : f32
    %378 = vector.broadcast %cst_122 : f32 to vector<16x16xf32>
    %379 = arith.subf %378, %377 : vector<16x16xf32>
    %380 = math.exp %379 : vector<16x16xf32>
    %381 = math.log1p %380 : vector<16x16xf32>
    %382 = arith.addf %371, %381 : vector<16x16xf32>
    %383 = arith.select %374, %376, %382 : vector<16x16xi1>, vector<16x16xf32>
    %384 = vector.broadcast %0 : f32 to vector<16x16xf32>
    %385 = arith.mulf %383, %384 : vector<16x16xf32>
    %cst_123 = arith.constant 9.99999974E-6 : f32
    %386 = vector.broadcast %cst_123 : f32 to vector<16x16xf32>
    %387 = arith.addf %385, %386 : vector<16x16xf32>
    %c0_124 = arith.constant 0 : index
    %c0_125 = arith.constant 0 : index
    %c0_126 = arith.constant 0 : index
    %388 = vector.load %arg5[%c0_124, %c0_125, %c0_126] : memref<1x16x16xf32, #tpu.memory_space<vmem>>, vector<1x16x16xf32>
    %389 = vector.shape_cast %388 : vector<1x16x16xf32> to vector<16x16xf32>
    %390 = arith.mulf %387, %389 : vector<16x16xf32>
    %391 = arith.addf %366, %390 : vector<16x16xf32>
    %c0_127 = arith.constant 0 : index
    %c0_128 = arith.constant 0 : index
    %c0_129 = arith.constant 0 : index
    %392 = vector.load %arg6[%c0_127, %c0_128, %c0_129] : memref<1x16x16xf32, #tpu.memory_space<vmem>>, vector<1x16x16xf32>
    %393 = vector.shape_cast %392 : vector<1x16x16xf32> to vector<16x16xf32>
    %394 = vector.shape_cast %391 : vector<16x16xf32> to vector<1x16x16xf32>
    tpu.vector_store %arg6[%c0_127, %c0_128, %c0_129], %394 {strides = array<i32>} : memref<1x16x16xf32, #tpu.memory_space<vmem>>, vector<1x16x16xf32>,
    return
  }
  func.func @transform_0(%arg0: i32, %arg1: memref<72xf32, #tpu.memory_space<smem>>, %arg2: memref<2xf32, #tpu.memory_space<smem>>, %arg3: memref<1xf32, #tpu.memory_space<smem>>) -> (i32, i32, i32, i32) {
    %c0_i32 = arith.constant 0 : i32
    %c0_i32_0 = arith.constant 0 : i32
    %c0_i32_1 = arith.constant 0 : i32
    %c0_i32_2 = arith.constant 0 : i32
    return %arg0, %c0_i32, %c0_i32_0, %c0_i32_1 : i32, i32, i32, i32
  }
  func.func @transform_1(%arg0: i32, %arg1: memref<72xf32, #tpu.memory_space<smem>>, %arg2: memref<2xf32, #tpu.memory_space<smem>>, %arg3: memref<1xf32, #tpu.memory_space<smem>>) -> (i32, i32, i32) {
    %c0_i32 = arith.constant 0 : i32
    %c0_i32_0 = arith.constant 0 : i32
    %c0_i32_1 = arith.constant 0 : i32
    return %arg0, %c0_i32, %c0_i32_0 : i32, i32, i32
  }
  func.func @transform_2(%arg0: i32, %arg1: memref<72xf32, #tpu.memory_space<smem>>, %arg2: memref<2xf32, #tpu.memory_space<smem>>, %arg3: memref<1xf32, #tpu.memory_space<smem>>) -> (i32, i32, i32) {
    %c0_i32 = arith.constant 0 : i32
    %c0_i32_0 = arith.constant 0 : i32
    %c0_i32_1 = arith.constant 0 : i32
    return %arg0, %c0_i32, %c0_i32_0 : i32, i32, i32
  }
}

</mosaic_0001>

<bundles_post_ra>
// kernel: tpu_custom_call.1
= control target key start
LH: loop header
LB: loop body
LE: loop exit
PB: predicated region body
PF: predicated region fallthrough
CT: control target
= control target key end

     0   :  { %s2342_s0 = inlined_call_operand.vmem [shape: f32[72], index: 0, kind: input, shape index: {}]   ;;  %s2343_s3 = inlined_call_operand.hbm [shape: f32[2,4,16,16], index: 3, kind: input, shape index: {}]   ;;  %s2344_s4 = inlined_call_operand.hbm [shape: f32[2,16,16], index: 4, kind: input, shape index: {}]   ;;  %s2345_s5 = inlined_call_operand.hbm [shape: f32[2,16,16], index: 5, kind: output, shape index: {}]   ;;  %s2346_s1 = inlined_call_operand.vmem [shape: f32[2], index: 1, kind: input, shape index: {}]   ;;  %s2347_s2 = inlined_call_operand.<no memory space> [shape: f32[1], index: 2, kind: input, shape index: {}]  }
   0x1   :  { %s10_s20 = sshll.u32 %s2342_s0, 4  ;;  %s14_s23 = sshll.u32 %s2346_s1, 4  ;;  %s11_s20 = int_to_ptr.vmem [resolvable:$true] %s10_s20  ;;  %s15_s23 = int_to_ptr.vmem [resolvable:$true] %s14_s23 }
   0x2   :  { %s1453_s24 = scalar_lea.vmem %s11_s20, 16  ;;  %p1458_p1 = scmp.lt.s32.totalorder %s11_s20, %s11_s20 }
   0x3   :  { %p1454_p0 = scmp.ne.s32.totalorder %s11_s20, %s1453_s24  ;;  %p1459_p2 = scmp.lt.s32.totalorder %s1453_s24, %s1453_s24 }
   0x5   :  { %p1460_p3 = por %p1459_p2, %p1458_p1 }
   0x7   :  { %p1461_p4 = pnand %p1460_p3, %p1454_p0 }
   0x9   :  { %1464 = shalt.err (!%p1461_p4)  }
   0xa   :  { %s1611_s25 = smov [#allocation4]   ;;  %s1465_s26 = scalar_lea.vmem %s15_s23, 16 }
   0xb   :  { %13 = dma.vmem_to_smem %s11_s20, 16, %s1611_s25, [#allocation3] }
   0xc   :  { %p1466_p5 = scmp.ne.s32.totalorder %s15_s23, %s1465_s26  ;;  %p1470_p6 = scmp.lt.s32.totalorder %s15_s23, %s15_s23 }
   0xd   :  { %p1471_p7 = scmp.lt.s32.totalorder %s1465_s26, %s1465_s26 }
   0xf   :  { %p1472_p8 = por %p1471_p7, %p1470_p6 }
  0x11   :  { %p1473_p9 = pnand %p1472_p8, %p1466_p5 }
  0x13   :  { %1476 = shalt.err (!%p1473_p9)  }
  0x14   :  { %s1612_s0 = smov [#allocation5]   ;;  %18 = sst [smem:[#allocation6]] %s2347_s2 }
  0x15   :  { %17 = dma.vmem_to_smem %s15_s23, 16, %s1612_s0, [#allocation3] }
  0x16   :  { %1581 = dma.done.wait [#allocation3], 32 }
  0x17   :  { %1582 = vsyncadd [#allocation3], 4294967264 }
  0x18   :  { %20 = sfence }
  0x19   :  { %21 = vsyncpa [#allocation8], 0 }
  0x1a   :  { %23 = vsyncpa [#allocation8 + $0x1], 0 }
  0x1b   :  { %24 = vsyncpa [#allocation11], 0 }
  0x1c   :  { %26 = vsyncpa [#allocation11 + $0x1], 0 }
  0x1d   :  { %27 = vsyncpa [#allocation9], 0 }
  0x1e   :  { %29 = vsyncpa [#allocation9 + $0x1], 0  ;;  %s1663_s28 = smov 0   ;;  %s1665_s29 = smov 0  }
  0x1f   :  { %s1667_s30 = smov 0   ;;  %s1669_s6 = smov 0  }
  0x20 LB: > { %s1684_s2 = sadd.s32 4294967295, %s1609_s6   ;;  %s1291_s7 = sadd.s32 4294967294, %s1609_s6   ;;  %s1609_s6 = sphi %s1669_s6, %s2363_s6   ;;  %s1605_s30 = sphi %s1667_s30, %s2362_s30   ;;  %s1601_s29 = sphi %s1665_s29, %s2361_s29   ;;  %s1597_s28 = sphi %s1663_s28, %s2360_s28  }
  0x21   : > { %s1688_s8 = sadd.s32 1, %s1609_s6   ;;  %s42_s9 = sadd.s32 1, %s1605_s30 }
  0x22   : > { %s39_s10 = ssub.s32 %s1609_s6, %s1688_s8  ;;  %p49_p10 = scmp.ne.s32.totalorder %s1605_s30, %s1601_s29 }
  0x23   : > { %p40_p11 = scmp.eq.s32.totalorder %s39_s10, 0  ;;  %p50_p12 = scmp.eq.s32.totalorder %s1609_s6, 0 }
  0x24   : > { %p55_p13 = scmp.ne.s32.totalorder %s1601_s29, %s1597_s28  ;;  %p56_p0 = scmp.eq.s32.totalorder %s1684_s2, 0 }
  0x25   : > { %s1700_s11 = scalar_select %p40_p11, %s1605_s30, %s42_s9  }
  0x26   : > { %p1702_p1 = por %p50_p12, %p49_p10  ;;  %p1706_p2 = por %p56_p0, %p55_p13 }
  0x27   : > { %p105_p3 = scmp.eq.s32.totalorder %s1684_s2, 1  ;;  %p111_p4 = scmp.eq.s32.totalorder %s1291_s7, 1 }
  0x28   : > { %s2351_s13 = scalar_select %p1706_p2, 1, 0 }
  0x29   : > { %p1401_p6 = scmp.lt.s32.totalorder %s1609_s6, 2  ;;  %p1713_p7 = por %p105_p3, %p49_p10 }
  0x2a   : > { %p1717_p8 = por %p111_p4, %p55_p13  ;;  %s1722_s16 = sand.u32 1, %s1605_s30  }
  0x2b   : > { %s2352_s14 = scalar_select %p1713_p7, 1, 0 }
  0x2c   : > { %s2353_s15 = scalar_select %p1717_p8, 1, 0 }
  0x2d   : > { %s1381_s17 = sshll.u32 %s1609_s6, 10  ;;  %s1294_s18 = sshll.u32 %s1722_s16, 6 }
  0x2e   : > { %s1729_s21 = scalar_lea.hbm %s2343_s3, %s1381_s17  ;;  %s135_s22 = scalar_lea.vmem [#allocation7], %s1294_s18 }
  0x2f   : > { %s142_s23 = sshll.u32 %s135_s22, 4  ;;  %p1733_p9 = pnand %p1401_p6, %p1702_p1  ;;  %s1737_s23 = int_to_ptr.vmem [resolvable:$true] %s142_s23 }
  0x30   : > { %s132_s25 = scalar_lea.sflag [#allocation8], %s1722_s16  ;;  %s1477_s26 = scalar_lea.hbm %s1729_s21, 1024 }
  0x31   : > { %p1478_p10 = scmp.ne.s32.totalorder %s1729_s21, %s1477_s26  ;;  %p1479_p11 = pneg %p1733_p9 }
  0x32   : > { %s1482_s27 = scalar_lea.hbm %s2343_s3, 2048  ;;  %p1483_p0 = scmp.lt.u32.totalorder %s1729_s21, %s2343_s3 }
  0x33   : > { %p1480_p12 = pnand %p1479_p11, %p1478_p10  ;;  %p1484_p1 = scmp.lt.u32.totalorder %s1482_s27, %s1477_s26 }
  0x34   : > { %p1486_p4 = scmp.lt.u32.totalorder %s1477_s26, %s1729_s21 }
  0x35   : > { %p1481_p13 = pneg %p1480_p12  ;;  %p1485_p3 = por %p1484_p1, %p1483_p0 }
  0x37   : > { %p1487_p6 = por %p1486_p4, %p1485_p3 }
  0x39   : > { %p1488_p5 = pnand %p1487_p6, %p1481_p13 }
  0x3b   : > { %1491 = shalt.err (!%p1488_p5)
}
  0x3c   : > { %s1492_s10 = scalar_lea.vmem %s1737_s23, 1024  ;;  %s1613_s12 = smov [#allocation7]  }
  0x3d   : > { %p1493_p10 = scmp.ne.s32.totalorder %s1737_s23, %s1492_s10  ;;  %s1497_s17 = sshll.u32 %s1613_s12, 4  ;;  %s1498_s17 = int_to_ptr.vmem [resolvable:$false] %s1497_s17 }
  0x3e   : > { %s1499_s18 = scalar_lea.vmem %s1498_s17, 2048  ;;  %p1500_p7 = scmp.lt.s32.totalorder %s1737_s23, %s1498_s17 }
  0x3f   : > { %p1495_p12 = pnand %p1493_p10, %p1479_p11  ;;  %p1501_p0 = scmp.lt.s32.totalorder %s1499_s18, %s1492_s10 }
  0x41   : > { %p1496_p8 = pneg %p1495_p12  ;;  %p1502_p1 = por %p1501_p0, %p1500_p7 }
  0x43   : > { %p1503_p3 = pnand %p1502_p1, %p1496_p8 }
  0x45   : > { %1506 = shalt.err (!%p1503_p3)
}
  0x46   : > { %s1614_s19 = smov 128   ;;  %s1615_s20 = smov 8  }
  0x47   : > { %1393 = dma.hbm_to_vmem [thread:$0]  (!%p1733_p9), %s1729_s21, 1024, %s1737_s23, %s132_s25, %s1614_s19, %s1614_s19, %s1615_s20  }
  0x48   : > { %p1300_p5 = scmp.ge.s32.totalorder %s1609_s6, 1  ;;  %p171_p7 = scmp.lt.s32.totalorder %s1609_s6, 3 }
  0x49   : > { %s1297_s22 = sshll.u32 %s1722_s16, 4  ;;  %s1382_s0 = sshll.u32 %s1609_s6, 8 }
  0x4a   : > { %p1773_p8 = pnand %p1300_p5, %p171_p7  ;;  %s156_s1 = scalar_lea.vmem [#allocation10], %s1297_s22 }
  0x4b   : > { %s163_s27 = sshll.u32 %s156_s1, 4  ;;  %s1781_s10 = scalar_lea.hbm %s2344_s4, %s1382_s0  ;;  %s1783_s27 = int_to_ptr.vmem [resolvable:$true] %s163_s27 }
  0x4c   : > { %s153_s21 = scalar_lea.sflag [#allocation11], %s1722_s16  ;;  %s1507_s23 = scalar_lea.hbm %s1781_s10, 256 }
  0x4d   : > { %p1508_p13 = scmp.ne.s32.totalorder %s1781_s10, %s1507_s23  ;;  %s1512_s17 = scalar_lea.hbm %s2344_s4, 512 }
  0x4e   : > { %p1513_p10 = scmp.lt.u32.totalorder %s1781_s10, %s2344_s4  ;;  %p1514_p12 = scmp.lt.u32.totalorder %s1512_s17, %s1507_s23 }
  0x4f   : > { %p1510_p4 = pnand %p1508_p13, %p1479_p11  ;;  %p1516_p1 = scmp.lt.u32.totalorder %s1507_s23, %s1781_s10 }
  0x50   : > { %p1515_p0 = por %p1514_p12, %p1513_p10 }
  0x51   : > { %p1511_p6 = pneg %p1510_p4 }
  0x52   : > { %p1517_p3 = por %p1516_p1, %p1515_p0 }
  0x54   : > { %p1518_p5 = pnand %p1517_p3, %p1511_p6 }
  0x56   : > { %1521 = shalt.err (!%p1518_p5)
}
  0x57   : > { %s1522_s0 = scalar_lea.vmem %s1783_s27, 256  ;;  %s1616_s1 = smov [#allocation10]  }
  0x58   : > { %p1523_p7 = scmp.ne.s32.totalorder %s1783_s27, %s1522_s0  ;;  %s1527_s7 = sshll.u32 %s1616_s1, 4  ;;  %s1528_s7 = int_to_ptr.vmem [resolvable:$false] %s1527_s7 }
  0x59   : > { %s1529_s9 = scalar_lea.vmem %s1528_s7, 512  ;;  %p1530_p2 = scmp.lt.s32.totalorder %s1783_s27, %s1528_s7 }
  0x5a   : > { %p1525_p13 = pnand %p1523_p7, %p1479_p11  ;;  %p1531_p10 = scmp.lt.s32.totalorder %s1529_s9, %s1522_s0 }
  0x5c   : > { %p1526_p4 = pneg %p1525_p13  ;;  %p1532_p12 = por %p1531_p10, %p1530_p2 }
  0x5e   : > { %p1533_p0 = pnand %p1532_p12, %p1526_p4 }
  0x60   : > { %1536 = shalt.err (!%p1533_p0)
}
  0x61   : > { %1396 = dma.hbm_to_vmem [thread:$0]  (!%p1733_p9), %s1781_s10, 256, %s1783_s27, %s153_s21, %s1614_s19, %s1614_s19, %s1615_s20  }
  0x62   : > { %175 = sbr.rel (%p1773_p8) target bundleno = 562 (0x232), region = 28  ;;  %s1817_s23 = sand.u32 (!%p1773_p8), 1, %s1601_s29  }
  0x63   : > { %s1301_s25 = sshll.u32 (!%p1773_p8), %s1817_s23, 6  ;;  %s178_s12 = scalar_lea.sflag (!%p1773_p8), [#allocation8], %s1817_s23 }
  0x64   : > { %s1821_s24 = scalar_lea.vmem (!%p1773_p8), [#allocation7], %s1301_s25  ;;  %p2356_p2 = scmp.ne.s32.totalorder (!%p1773_p8), %s2351_s13, 0 }
  0x69   : > { %1584 = dma.done.wait (%p2356_p2), %s178_s12, 1024  }
  0x6a   : > { %1586 = vsyncadd (%p2356_p2), %s178_s12, 4294966272  ;;  %s1302_s16 = sshll.u32 %s1817_s23, 4  ;;  %s187_s19 = scalar_lea.sflag [#allocation11], %s1817_s23 }
  0x6b   : > { %s1831_s20 = scalar_lea.vmem [#allocation10], %s1302_s16 }
  0x6c   : > { %1588 = dma.done.wait (%p2356_p2), %s187_s19, 256  }
  0x6d   : > { %1590 = vsyncadd (%p2356_p2), %s187_s19, 4294967040  ;;  %vm217_vm0 = vcmask 146432   ;;  %vm221_vm1 = vcmask 139264   ;;  %v1617_v0 = vmov 0.0   ;;  %v311_v1 = vld [vmem:[%s1821_s24] sm:$0xff]  ;;  %v313_v2 = vld [vmem:[%s1821_s24 + $0x10] sm:$0xff] }
  0x6e   : > { %219 = vst.msk [vmem:[#allocation2 + $0x8] sm:$0xff] %vm217_vm0, %v1617_v0  ;;  %218 = vst.msk [vmem:[#allocation2] sm:$0xff] %vm217_vm0, %v1617_v0  ;;  %s1618_s13 = smov 1   ;;  %v312_v3 = vld [vmem:[%s1821_s24 + $0x8] sm:$0xff]  ;;  %v314_v4 = vld [vmem:[%s1821_s24 + $0x18] sm:$0xff]  ;;  %vm351_vm2 = vcmask 138248  }
  0x6f   : > { %220 = vst.msk [vmem:[#allocation2 + $0x10] sm:$0xff] %vm217_vm0, %v1617_v0  ;;  %223 = vst.msk [vmem:[#allocation2 + $0x20] sm:$0xff] %vm217_vm0, %v1617_v0  ;;  %327 = vrot.lane.b32.xlu0 %v311_v1, %s1618_s13  ;;  %331 = vrot.lane.b32.xlu1 %v313_v2, %s1618_s13  ;;  %v315_v5 = vld [vmem:[%s1821_s24 + $0x20] sm:$0xff]  ;;  %v316_v6 = vld [vmem:[%s1821_s24 + $0x28] sm:$0xff]  ;;  %s1304_s26 = sld [smem:[#allocation4 + $0x1]]  ;;  %s1340_s27 = sld [smem:[#allocation4 + $0x25]] }
  0x70   : > { %224 = vst.msk [vmem:[#allocation2 + $0x28] sm:$0xff] %vm217_vm0, %v1617_v0  ;;  %225 = vst.msk [vmem:[#allocation2 + $0x30] sm:$0xff] %vm217_vm0, %v1617_v0  ;;  %v317_v7 = vld [vmem:[%s1821_s24 + $0x30] sm:$0xff]  ;;  %v318_v8 = vld [vmem:[%s1821_s24 + $0x38] sm:$0xff]  ;;  %s1305_s10 = sld [smem:[#allocation4 + $0x2]]  ;;  %s1341_s21 = sld [smem:[#allocation4 + $0x26]] }
  0x71   : > { %227 = vst.msk [vmem:[#allocation2 + $0x40] sm:$0xff] %vm217_vm0, %v1617_v0  ;;  %228 = vst.msk [vmem:[#allocation2 + $0x48] sm:$0xff] %vm217_vm0, %v1617_v0  ;;  %s1619_s17 = smov 127   ;;  %s1307_s18 = sld [smem:[#allocation4 + $0x4]]  ;;  %vm1178_vm7 = vcmask 130048  }
  0x72   : > { %229 = vst.msk [vmem:[#allocation2 + $0x50] sm:$0xff] %vm217_vm0, %v1617_v0  ;;  %231 = vst.msk [vmem:[#allocation2 + $0x60] sm:$0xff] %vm217_vm0, %v1617_v0  ;;  %s1343_s22 = sld [smem:[#allocation4 + $0x28]]  ;;  %s1620_s0 = smov 126  }
  0x73   : > { %232 = vst.msk [vmem:[#allocation2 + $0x68] sm:$0xff] %vm217_vm0, %v1617_v0  ;;  %233 = vst.msk [vmem:[#allocation2 + $0x70] sm:$0xff] %vm217_vm0, %v1617_v0  ;;  %329 = vrot.lane.b32.xlu0 %v312_v3, %s1618_s13  ;;  %333 = vrot.lane.b32.xlu1 %v314_v4, %s1618_s13  ;;  %s1308_s1 = sld [smem:[#allocation4 + $0x5]]  ;;  %s1344_s7 = sld [smem:[#allocation4 + $0x29]] }
  0x74   : > { %222 = vst.msk [vmem:[#allocation2 + $0x18] sm:$0x1] %vm221_vm1, %v1617_v0  ;;  %226 = vst.msk [vmem:[#allocation2 + $0x38] sm:$0x1] %vm221_vm1, %v1617_v0  ;;  %s1346_s9 = sld [smem:[#allocation4 + $0x2b]]  ;;  %s1347_s25 = sld [smem:[#allocation4 + $0x2c]] }
  0x75   : > { %230 = vst.msk [vmem:[#allocation2 + $0x58] sm:$0x1] %vm221_vm1, %v1617_v0  ;;  %234 = vst.msk [vmem:[#allocation2 + $0x78] sm:$0x1] %vm221_vm1, %v1617_v0  ;;  %v372_v13 = vstv %s1304_s26  ;;  %v385_v18 = vstv %s1340_s27  ;;  %s1349_s12 = sld [smem:[#allocation4 + $0x2e]]  ;;  %s1350_s24 = sld [smem:[#allocation4 + $0x2f]] }
  0x76   : > { %v398_v24 = vstv %s1305_s10  ;;  %v411_v27 = vstv %s1341_s21  ;;  %s1352_s19 = sld [smem:[#allocation4 + $0x31]]  ;;  %s1355_s26 = sld [smem:[#allocation4 + $0x34]] }
  0x77   : > { %335 = vrot.lane.b32.xlu0 %v315_v5, %s1618_s13  ;;  %337 = vrot.lane.b32.xlu1 %v316_v6, %s1618_s13  ;;  %v436_v31 = vstv %s1307_s18  ;;  %s1356_s27 = sld [smem:[#allocation4 + $0x35]]  ;;  %s1358_s10 = sld [smem:[#allocation4 + $0x37]] }
  0x78   : > { %v449_v35 = vstv %s1343_s22  ;;  %s1359_s21 = sld [smem:[#allocation4 + $0x38]]  ;;  %s1361_s18 = sld [smem:[#allocation4 + $0x3a]] }
  0x79   : > { %v462_v38 = vstv %s1308_s1  ;;  %v475_v41 = vstv %s1344_s7  ;;  %s1362_s22 = sld [smem:[#allocation4 + $0x3b]]  ;;  %s1364_s1 = sld [smem:[#allocation4 + $0x3d]] }
  0x7a   : > { %v513_v45 = vstv %s1346_s9  ;;  %v539_v49 = vstv %s1347_s25  ;;  %s1365_s7 = sld [smem:[#allocation4 + $0x3e]]  ;;  %s1310_s9 = sld [smem:[#allocation4 + $0x7]] }
  0x7b   : > { %339 = vrot.lane.b32.xlu0 %v317_v7, %s1618_s13  ;;  %341 = vrot.lane.b32.xlu1 %v318_v8, %s1618_s13  ;;  %v578_v51 = vstv %s1349_s12  ;;  %v604_v57 = vstv %s1350_s24  ;;  %s1353_s13 = sld [smem:[#allocation4 + $0x32]]  ;;  %s1367_s25 = sld [smem:[#allocation4 + $0x40]] }
  0x7c   : > { %v642_v61 = vstv %s1352_s19  ;;  %v706_v5 = vstv %s1355_s26  ;;  %s1311_s12 = sld [smem:[#allocation4 + $0x8]]  ;;  %s1368_s24 = sld [smem:[#allocation4 + $0x41]] }
  0x7d   : > { %s1313_s19 = sld [smem:[#allocation4 + $0xa]]  ;;  %s1997_s26 = sld [smem:[#allocation4]] }
  0x7e   : > { %p2357_p11 = scmp.ne.s32.totalorder %s2352_s14, 0 }
  0x81   : > { %v668_v1 = vstv %s1353_s13  ;;  %s1370_s13 = sld [smem:[#allocation4 + $0x43]] }
  0xe1   : > { %v328_v9 = vpop.permute.xlu0 %327  ;;  %v332_v10 = vpop.permute.xlu1 %331 }
  0xe2   : > { %352 = vst.msk [vmem:[#allocation2 + $0x8] sm:$0xff] %vm351_vm2, %v328_v9  ;;  %354 = vst.msk [vmem:[#allocation2 + $0x28] sm:$0xff] %vm351_vm2, %v332_v10  ;;  %v732_v9 = vstv %s1356_s27  ;;  %s1999_s27 = sld [smem:[#allocation4 + $0xb]] }
  0xe5   : > { %v330_v11 = vpop.permute.xlu0 %329  ;;  %v334_v12 = vpop.permute.xlu1 %333 }
  0xe6   : > { %353 = vst.msk [vmem:[#allocation2 + $0x10] sm:$0xff] %vm351_vm2, %v330_v11  ;;  %355 = vst.msk [vmem:[#allocation2 + $0x30] sm:$0xff] %vm351_vm2, %v334_v12  ;;  %v771_v11 = vstv %s1358_s10  ;;  %s2005_s10 = sld [smem:[#allocation5]] }
  0xe9   : > { %v1853_v14 = vld [vmem:[#allocation2 + $0x7] sm:$0xff]  ;;  %v336_v15 = vpop.permute.xlu0 %335  ;;  %v338_v16 = vpop.permute.xlu1 %337 }
  0xea   : > { %v373_v17 = vmul.f32 %v372_v13, %v1853_v14  ;;  %356 = vst.msk [vmem:[#allocation2 + $0x48] sm:$0xff] %vm351_vm2, %v336_v15  ;;  %357 = vst.msk [vmem:[#allocation2 + $0x50] sm:$0xff] %vm351_vm2, %v338_v16  ;;  %v386_v23 = vmul.f32 %v385_v18, %v1853_v14  ;;  %v399_v26 = vmul.f32 %v398_v24, %v1853_v14  ;;  %v1873_v30 = vld [vmem:[#allocation2 + $0x8] sm:$0xff] }
  0xeb   : > { %v412_v29 = vmul.f32 %v411_v27, %v1853_v14  ;;  %v437_v33 = vmul.f32 %v436_v31, %v1873_v30  ;;  %v450_v37 = vmul.f32 %v449_v35, %v1873_v30  ;;  %v463_v40 = vmul.f32 %v462_v38, %v1873_v30  ;;  %v1903_v50 = vld [vmem:[#allocation2 + $0x27] sm:$0xff] }
  0xec   : > { %377 = vrot.lane.b32.xlu0 %v373_v17, %s1619_s17  ;;  %v476_v43 = vmul.f32 %v475_v41, %v1873_v30  ;;  %v579_v54 = vmul.f32 %v578_v51, %v1903_v50  ;;  %v605_v59 = vmul.f32 %v604_v57, %v1903_v50  ;;  %v1917_v60 = vld [vmem:[#allocation2 + $0x28] sm:$0xff]  ;;  %v797_v17 = vstv %s1359_s21  ;;  %s2007_s21 = sld [smem:[#allocation4 + $0x24]] }
  0xed   : > { %v1859_v19 = vld [vmem:[#allocation2 + $0xf] sm:$0xff]  ;;  %v340_v20 = vpop.permute.xlu0 %339  ;;  %v342_v21 = vpop.permute.xlu1 %341  ;;  %v643_v63 = vmul.f32 %v642_v61, %v1917_v60  ;;  %v669_v3 = vmul.f32 %v668_v1, %v1917_v60 }
  0xee   : > { %v374_v22 = vmul.f32 %v372_v13, %v1859_v19  ;;  %358 = vst.msk [vmem:[#allocation2 + $0x68] sm:$0xff] %vm351_vm2, %v340_v20  ;;  %359 = vst.msk [vmem:[#allocation2 + $0x70] sm:$0xff] %vm351_vm2, %v342_v21  ;;  %v387_v25 = vmul.f32 %v385_v18, %v1859_v19  ;;  %v400_v28 = vmul.f32 %v398_v24, %v1859_v19  ;;  %v1879_v34 = vld [vmem:[#allocation2 + $0x10] sm:$0xff] }
  0xef   : > { %v413_v32 = vmul.f32 %v411_v27, %v1859_v19  ;;  %v438_v36 = vmul.f32 %v436_v31, %v1879_v34  ;;  %v451_v39 = vmul.f32 %v449_v35, %v1879_v34  ;;  %v464_v42 = vmul.f32 %v462_v38, %v1879_v34  ;;  %v1893_v44 = vld [vmem:[#allocation2 + $0x9] sm:$0xff]  ;;  %v1899_v48 = vld [vmem:[#allocation2 + $0x11] sm:$0xff] }
  0xf0   : > { %379 = vrot.lane.b32.xlu1 %v374_v22, %s1619_s17  ;;  %390 = vrot.lane.b32.xlu0 %v386_v23, %s1619_s17  ;;  %v477_v46 = vmul.f32 %v475_v41, %v1879_v34  ;;  %v514_v47 = vmul.f32 %v513_v45, %v1893_v44  ;;  %v515_v52 = vmul.f32 %v513_v45, %v1899_v48  ;;  %v1911_v56 = vld [vmem:[#allocation2 + $0x2f] sm:$0xff]  ;;  %v835_v23 = vstv %s1361_s18  ;;  %s2011_s18 = sld [smem:[#allocation4 + $0x44]] }
  0xf1   : > { %v540_v53 = vmul.f32 %v539_v49, %v1893_v44  ;;  %v541_v55 = vmul.f32 %v539_v49, %v1899_v48  ;;  %v580_v58 = vmul.f32 %v578_v51, %v1911_v56  ;;  %v606_v62 = vmul.f32 %v604_v57, %v1911_v56  ;;  %v1923_v0 = vld [vmem:[#allocation2 + $0x30] sm:$0xff]  ;;  %v1939_v10 = vld [vmem:[#allocation2 + $0x47] sm:$0xff] }
  0xf2   : > { %v644_v2 = vmul.f32 %v642_v61, %v1923_v0  ;;  %v1929_v4 = vld [vmem:[#allocation2 + $0x29] sm:$0xff]  ;;  %v670_v6 = vmul.f32 %v668_v1, %v1923_v0  ;;  %v1935_v8 = vld [vmem:[#allocation2 + $0x31] sm:$0xff]  ;;  %v772_v15 = vmul.f32 %v771_v11, %v1939_v10  ;;  %v798_v21 = vmul.f32 %v797_v17, %v1939_v10 }
  0xf3   : > { %v707_v7 = vmul.f32 %v706_v5, %v1929_v4  ;;  %v708_v12 = vmul.f32 %v706_v5, %v1935_v8  ;;  %v733_v13 = vmul.f32 %v732_v9, %v1929_v4  ;;  %v1946_v16 = vld [vmem:[#allocation2 + $0x4f] sm:$0xff]  ;;  %v734_v18 = vmul.f32 %v732_v9, %v1935_v8 }
  0xf4   : > { %392 = vrot.lane.b32.xlu1 %v387_v25, %s1619_s17  ;;  %403 = vrot.lane.b32.xlu0 %v399_v26, %s1620_s0  ;;  %v773_v20 = vmul.f32 %v771_v11, %v1946_v16  ;;  %v1953_v22 = vld [vmem:[#allocation2 + $0x48] sm:$0xff]  ;;  %v799_v24 = vmul.f32 %v797_v17, %v1946_v16  ;;  %v1959_v26 = vld [vmem:[#allocation2 + $0x50] sm:$0xff]  ;;  %v861_v27 = vstv %s1362_s22  ;;  %v526_v51 = vstv %s1311_s12  ;;  %s2018_s22 = sld [smem:[#allocation5 + $0x1]]  ;;  %s2049_s12 = sld [smem:[#allocation4 + $0x27]] }
  0xf5   : > { %v836_v25 = vmul.f32 %v835_v23, %v1953_v22  ;;  %v1965_v31 = vld [vmem:[#allocation2 + $0x49] sm:$0xff] }
  0xf6   : > { %v1979_v41 = vld [vmem:[#allocation2 + $0x67] sm:$0xff]  ;;  %v2020_v5 = vld [vmem:[#allocation2 + $0x70] sm:$0xff] }
  0xf8   : > { %405 = vrot.lane.b32.xlu1 %v400_v28, %s1620_s0  ;;  %416 = vrot.lane.b32.xlu0 %v412_v29, %s1620_s0  ;;  %v837_v28 = vmul.f32 %v835_v23, %v1959_v26  ;;  %v862_v29 = vmul.f32 %v861_v27, %v1953_v22 }
  0xfc   : > { %418 = vrot.lane.b32.xlu1 %v413_v32, %s1620_s0  ;;  %441 = vrot.lane.b32.xlu0 %v437_v33, %s1619_s17  ;;  %v899_v32 = vstv %s1364_s1  ;;  %v863_v33 = vmul.f32 %v861_v27, %v1959_v26  ;;  %s2023_s1 = sld [smem:[#allocation4 + $0xd]] }
  0xfd   : > { %v900_v35 = vmul.f32 %v899_v32, %v1965_v31 }
 0x100   : > { %443 = vrot.lane.b32.xlu1 %v438_v36, %s1619_s17  ;;  %454 = vrot.lane.b32.xlu0 %v450_v37, %s1619_s17  ;;  %v1971_v36 = vld [vmem:[#allocation2 + $0x51] sm:$0xff]  ;;  %v925_v37 = vstv %s1365_s7  ;;  %s2033_s7 = sld [smem:[#allocation4 + $0x46]] }
 0x101   : > { %v901_v38 = vmul.f32 %v899_v32, %v1971_v36 }
 0x104   : > { %456 = vrot.lane.b32.xlu1 %v451_v39, %s1619_s17  ;;  %467 = vrot.lane.b32.xlu0 %v463_v40, %s1620_s0  ;;  %v926_v39 = vmul.f32 %v925_v37, %v1965_v31  ;;  %v500_v40 = vstv %s1310_s9  ;;  %s2037_s9 = sld [smem:[#allocation4 + $0x3]] }
 0x105   : > { %v501_v45 = vmul.f32 %v500_v40, %v1893_v44  ;;  %v502_v49 = vmul.f32 %v500_v40, %v1899_v48 }
 0x108   : > { %469 = vrot.lane.b32.xlu1 %v464_v42, %s1620_s0  ;;  %480 = vrot.lane.b32.xlu0 %v476_v43, %s1620_s0  ;;  %v964_v42 = vstv %s1367_s25  ;;  %v927_v43 = vmul.f32 %v925_v37, %v1971_v36  ;;  %s2045_s25 = sld [smem:[#allocation4 + $0xe]] }
 0x10c   : > { %482 = vrot.lane.b32.xlu1 %v477_v46, %s1620_s0  ;;  %518 = vrot.lane.b32.xlu0 %v514_v47, %s1619_s17  ;;  %v965_v46 = vmul.f32 %v964_v42, %v1979_v41  ;;  %v1986_v47 = vld [vmem:[#allocation2 + $0x6f] sm:$0xff] }
 0x110   : > { %520 = vrot.lane.b32.xlu1 %v515_v52, %s1619_s17  ;;  %544 = vrot.lane.b32.xlu0 %v540_v53, %s1620_s0  ;;  %v966_v52 = vmul.f32 %v964_v42, %v1986_v47  ;;  %v527_v53 = vmul.f32 %v526_v51, %v1893_v44  ;;  %v2056_v42 = vld [vmem:[#allocation2 + $0x69] sm:$0xff] }
 0x114   : > { %546 = vrot.lane.b32.xlu1 %v541_v55, %s1620_s0  ;;  %583 = vrot.lane.b32.xlu0 %v579_v54, %s1619_s17  ;;  %v990_v54 = vstv %s1368_s24  ;;  %v528_v55 = vmul.f32 %v526_v51, %v1899_v48  ;;  %s2054_s24 = sld [smem:[#allocation4 + $0x47]] }
 0x115   : > { %v991_v57 = vmul.f32 %v990_v54, %v1979_v41 }
 0x118   : > { %585 = vrot.lane.b32.xlu1 %v580_v58, %s1619_s17  ;;  %609 = vrot.lane.b32.xlu0 %v605_v59, %s1620_s0  ;;  %v565_v58 = vstv %s1313_s19  ;;  %v992_v59 = vmul.f32 %v990_v54, %v1986_v47  ;;  %s2068_s19 = sld [smem:[#allocation4 + $0x10]] }
 0x119   : > { %v566_v61 = vmul.f32 %v565_v58, %v1903_v50  ;;  %v567_v1 = vmul.f32 %v565_v58, %v1911_v56 }
 0x11c   : > { %611 = vrot.lane.b32.xlu1 %v606_v62, %s1620_s0  ;;  %647 = vrot.lane.b32.xlu0 %v643_v63, %s1619_s17  ;;  %v2009_v62 = vld [vmem:[#allocation2 + $0x68] sm:$0xff]  ;;  %v1028_v63 = vstv %s1370_s13  ;;  %s2078_s13 = sld [smem:[#allocation4 + $0x11]] }
 0x11d   : > { %v1030_v9 = vmul.f32 %v1028_v63, %v2020_v5 }
 0x120   : > { %649 = vrot.lane.b32.xlu1 %v644_v2, %s1619_s17  ;;  %673 = vrot.lane.b32.xlu0 %v669_v3, %s1620_s0  ;;  %v1029_v2 = vmul.f32 %v1028_v63, %v2009_v62  ;;  %v362_v3 = vstv %s1997_s26  ;;  %s2082_s26 = sld [smem:[#allocation4 + $0x6]] }
 0x124   : > { %675 = vrot.lane.b32.xlu1 %v670_v6, %s1620_s0  ;;  %711 = vrot.lane.b32.xlu0 %v707_v7, %s1619_s17  ;;  %v591_v6 = vstv %s1999_s27  ;;  %v363_v7 = vmul.f32 %v362_v3, %v1853_v14  ;;  %s2088_s27 = sld [smem:[#allocation4 + $0x13]] }
 0x125   : > { %v592_v11 = vmul.f32 %v591_v6, %v1903_v50  ;;  %v593_v23 = vmul.f32 %v591_v6, %v1911_v56  ;;  %v1118_v6 = vstv %s2054_s24  ;;  %s2154_s24 = sld [smem:[#allocation4 + $0x33]] }
 0x128   : > { %713 = vrot.lane.b32.xlu1 %v708_v12, %s1619_s17  ;;  %737 = vrot.lane.b32.xlu0 %v733_v13, %s1620_s0  ;;  %v308_v12 = vstv %s2005_s10  ;;  %v367_v13 = vstv %s2007_s21  ;;  %s2092_s10 = sld [smem:[#allocation4 + $0x2a]]  ;;  %s2096_s21 = sld [smem:[#allocation4 + $0x14]] }
 0x129   : > { %v365_v17 = vadd.f32 %v363_v7, %v308_v12  ;;  %v369_v32 = vmul.f32 %v367_v13, %v1859_v19 }
 0x12c   : > { %739 = vrot.lane.b32.xlu1 %v734_v18, %s1620_s0  ;;  %776 = vrot.lane.b32.xlu0 %v772_v15, %s1619_s17  ;;  %v1054_v15 = vstv %s2011_s18  ;;  %v364_v18 = vmul.f32 %v362_v3, %v1859_v19  ;;  %v426_v19 = vstv %s2037_s9  ;;  %s2105_s18 = sld [smem:[#allocation4 + $0x16]]  ;;  %s2135_s9 = sld [smem:[#allocation4 + $0x30]] }
 0x12d   : > { %v1056_v37 = vmul.f32 %v1054_v15, %v2020_v5  ;;  %v427_v58 = vmul.f32 %v426_v19, %v1873_v30 }
 0x130   : > { %778 = vrot.lane.b32.xlu1 %v773_v20, %s1619_s17  ;;  %802 = vrot.lane.b32.xlu0 %v798_v21, %s1620_s0  ;;  %v368_v20 = vmul.f32 %v367_v13, %v1853_v14 }
 0x134   : > { %804 = vrot.lane.b32.xlu1 %v799_v24, %s1620_s0  ;;  %840 = vrot.lane.b32.xlu0 %v836_v25, %s1619_s17  ;;  %v1055_v24 = vmul.f32 %v1054_v15, %v2009_v62  ;;  %v310_v25 = vstv %s2018_s22  ;;  %s2111_s22 = sld [smem:[#allocation4 + $0x2d]] }
 0x135   : > { %v370_v14 = vadd.f32 %v368_v20, %v310_v25 }
 0x138   : > { %842 = vrot.lane.b32.xlu1 %v837_v28, %s1619_s17  ;;  %866 = vrot.lane.b32.xlu0 %v862_v29, %s1620_s0  ;;  %v629_v28 = vstv %s2023_s1  ;;  %v366_v29 = vadd.f32 %v364_v18, %v308_v12  ;;  %s2119_s1 = sld [smem:[#allocation4 + $0x17]] }
 0x139   : > { %v631_v51 = vmul.f32 %v629_v28, %v1923_v0 }
 0x13c   : > { %868 = vrot.lane.b32.xlu1 %v863_v33, %s1620_s0  ;;  %904 = vrot.lane.b32.xlu0 %v900_v35, %s1619_s17 }
 0x140   : > { %906 = vrot.lane.b32.xlu1 %v901_v38, %s1619_s17  ;;  %930 = vrot.lane.b32.xlu0 %v926_v39, %s1620_s0  ;;  %v630_v38 = vmul.f32 %v629_v28, %v1917_v60 }
 0x144   : > { %932 = vrot.lane.b32.xlu1 %v927_v43, %s1620_s0  ;;  %505 = vrot.lane.b32.xlu0 %v501_v45, %s1619_s17  ;;  %v1092_v43 = vstv %s2033_s7  ;;  %v371_v45 = vadd.f32 %v369_v32, %v310_v25  ;;  %s2130_s7 = sld [smem:[#allocation4 + $0x19]] }
 0x148   : > { %507 = vrot.lane.b32.xlu1 %v502_v49, %s1619_s17  ;;  %969 = vrot.lane.b32.xlu0 %v965_v46, %s1619_s17 }
 0x14c   : > { %971 = vrot.lane.b32.xlu1 %v966_v52, %s1619_s17  ;;  %531 = vrot.lane.b32.xlu0 %v527_v53, %s1620_s0  ;;  %v1093_v52 = vmul.f32 %v1092_v43, %v2056_v42 }
 0x150   : > { %533 = vrot.lane.b32.xlu1 %v528_v55, %s1620_s0  ;;  %995 = vrot.lane.b32.xlu0 %v991_v57, %s1620_s0  ;;  %v2064_v55 = vld [vmem:[#allocation2 + $0x71] sm:$0xff]  ;;  %v655_v57 = vstv %s2045_s25  ;;  %s2141_s25 = sld [smem:[#allocation4 + $0x1a]] }
 0x151   : > { %v656_v3 = vmul.f32 %v655_v57, %v1917_v60  ;;  %v657_v20 = vmul.f32 %v655_v57, %v1923_v0 }
 0x154   : > { %997 = vrot.lane.b32.xlu1 %v992_v59, %s1620_s0  ;;  %570 = vrot.lane.b32.xlu0 %v566_v61, %s1619_s17  ;;  %v431_v59 = vstv %s2049_s12  ;;  %s2149_s12 = sld [smem:[#allocation4 + $0x1c]] }
 0x155   : > { %v432_v12 = vmul.f32 %v431_v59, %v1873_v30  ;;  %v693_v30 = vstv %s2068_s19  ;;  %v433_v25 = vmul.f32 %v431_v59, %v1879_v34  ;;  %v784_v59 = vstv %s2096_s21  ;;  %s2160_s19 = sld [smem:[#allocation4 + $0x1d]]  ;;  %s2192_s21 = sld [smem:[#allocation4 + $0x39]] }
 0x156   : > { %v694_v32 = vmul.f32 %v693_v30, %v1929_v4 }
 0x158   : > { %572 = vrot.lane.b32.xlu1 %v567_v1, %s1619_s17  ;;  %1033 = vrot.lane.b32.xlu0 %v1029_v2, %s1619_s17  ;;  %v1094_v2 = vmul.f32 %v1092_v43, %v2064_v55 }
 0x15c   : > { %1035 = vrot.lane.b32.xlu1 %v1030_v9, %s1619_s17  ;;  %596 = vrot.lane.b32.xlu0 %v592_v11, %s1620_s0  ;;  %v428_v11 = vmul.f32 %v426_v19, %v1879_v34 }
 0x15e   : > { %v378_v21 = vpop.permute.xlu0 %377 }
 0x15f   : > { %v383_v27 = vadd.f32 %v378_v21, %v365_v17  ;;  %v1119_v21 = vmul.f32 %v1118_v6, %v2056_v42 }
 0x160   : > { %598 = vrot.lane.b32.xlu1 %v593_v23, %s1620_s0  ;;  %1059 = vrot.lane.b32.xlu0 %v1055_v24, %s1620_s0 }
 0x162   : > { %v380_v33 = vpop.permute.xlu1 %379  ;;  %v391_v35 = vpop.permute.xlu0 %390 }
 0x163   : > { %v384_v39 = vadd.f32 %v380_v33, %v366_v29  ;;  %v396_v40 = vadd.f32 %v391_v35, %v370_v14  ;;  %v1120_v14 = vmul.f32 %v1118_v6, %v2064_v55  ;;  %v719_v35 = vstv %s2078_s13  ;;  %s2168_s13 = sld [smem:[#allocation4 + $0x1f]] }
 0x164   : > { %1061 = vrot.lane.b32.xlu1 %v1056_v37, %s1620_s0  ;;  %634 = vrot.lane.b32.xlu0 %v630_v38, %s1619_s17  ;;  %v490_v37 = vstv %s2082_s26  ;;  %v720_v43 = vmul.f32 %v719_v35, %v1929_v4  ;;  %v721_v57 = vmul.f32 %v719_v35, %v1935_v8  ;;  %s2173_s26 = sld [smem:[#allocation4 + $0x36]] }
 0x166   : > { %v393_v46 = vpop.permute.xlu1 %392  ;;  %v404_v49 = vpop.permute.xlu0 %403 }
 0x167   : > { %v397_v53 = vadd.f32 %v393_v46, %v371_v45  ;;  %v409_v54 = vadd.f32 %v404_v49, %v383_v27  ;;  %v758_v46 = vstv %s2088_s27  ;;  %v491_v49 = vmul.f32 %v490_v37, %v1893_v44  ;;  %s2179_s27 = sld [smem:[#allocation4 + $0x20]] }
 0x168   : > { %636 = vrot.lane.b32.xlu1 %v631_v51, %s1619_s17  ;;  %1097 = vrot.lane.b32.xlu0 %v1093_v52, %s1619_s17  ;;  %v495_v51 = vstv %s2092_s10  ;;  %s2187_s10 = sld [smem:[#allocation4 + $0x22]] }
 0x169   : > { %v429_v61 = vadd.f32 %v427_v58, %v409_v54  ;;  %v759_v58 = vmul.f32 %v758_v46, %v1939_v10 }
 0x16a   : > { %v406_v63 = vpop.permute.xlu1 %405  ;;  %v417_v1 = vpop.permute.xlu0 %416 }
 0x16b   : > { %v410_v7 = vadd.f32 %v406_v63, %v384_v39  ;;  %v422_v9 = vadd.f32 %v417_v1, %v396_v40  ;;  %v695_v40 = vmul.f32 %v693_v30, %v1935_v8  ;;  %v496_v1 = vmul.f32 %v495_v51, %v1893_v44 }
 0x16c   : > { %1099 = vrot.lane.b32.xlu1 %v1094_v2, %s1619_s17  ;;  %660 = vrot.lane.b32.xlu0 %v656_v3, %s1620_s0  ;;  %v492_v2 = vmul.f32 %v490_v37, %v1899_v48  ;;  %v497_v44 = vmul.f32 %v495_v51, %v1899_v48 }
 0x16d   : > { %v430_v13 = vadd.f32 %v428_v11, %v410_v7  ;;  %v434_v15 = vadd.f32 %v432_v12, %v422_v9  ;;  %v760_v11 = vmul.f32 %v758_v46, %v1946_v16  ;;  %v785_v12 = vmul.f32 %v784_v59, %v1939_v10 }
 0x16e   : > { %v419_v17 = vpop.permute.xlu1 %418  ;;  %v442_v18 = vpop.permute.xlu0 %441 }
 0x16f   : > { %v423_v23 = vadd.f32 %v419_v17, %v397_v53  ;;  %v447_v24 = vadd.f32 %v442_v18, %v429_v61  ;;  %v560_v17 = vstv %s2111_s22  ;;  %s2209_s22 = sld [smem:[#allocation4 + $0x3c]] }
 0x170   : > { %662 = vrot.lane.b32.xlu1 %v657_v20, %s1620_s0  ;;  %1123 = vrot.lane.b32.xlu0 %v1119_v21, %s1620_s0  ;;  %v562_v37 = vmul.f32 %v560_v17, %v1911_v56 }
 0x171   : > { %v435_v27 = vadd.f32 %v433_v25, %v423_v23  ;;  %v561_v25 = vmul.f32 %v560_v17, %v1903_v50 }
 0x172   : > { %v444_v28 = vpop.permute.xlu1 %443  ;;  %v455_v29 = vpop.permute.xlu0 %454 }
 0x173   : > { %v448_v34 = vadd.f32 %v444_v28, %v430_v13  ;;  %v460_v33 = vadd.f32 %v455_v29, %v434_v15  ;;  %v822_v15 = vstv %s2105_s18  ;;  %s2198_s18 = sld [smem:[#allocation4 + $0x23]] }
 0x174   : > { %1125 = vrot.lane.b32.xlu1 %v1120_v14, %s1620_s0  ;;  %698 = vrot.lane.b32.xlu0 %v694_v32, %s1619_s17  ;;  %v823_v30 = vmul.f32 %v822_v15, %v1953_v22 }
 0x176   : > { %v457_v38 = vpop.permute.xlu1 %456  ;;  %v468_v39 = vpop.permute.xlu0 %467 }
 0x177   : > { %v461_v19 = vadd.f32 %v457_v38, %v435_v27  ;;  %v473_v45 = vadd.f32 %v468_v39, %v447_v24  ;;  %v786_v24 = vmul.f32 %v784_v59, %v1946_v16  ;;  %v848_v27 = vstv %s2119_s1  ;;  %s1366_s1 = sld [smem:[#allocation4 + $0x3f]] }
 0x178   : > { %700 = vrot.lane.b32.xlu1 %v695_v40, %s1619_s17  ;;  %724 = vrot.lane.b32.xlu0 %v720_v43, %s1620_s0  ;;  %v886_v38 = vstv %s2130_s7  ;;  %v624_v39 = vstv %s2135_s9  ;;  %v850_v46 = vmul.f32 %v848_v27, %v1959_v26  ;;  %s1315_s7 = sld [smem:[#allocation4 + $0xc]]  ;;  %s1372_s9 = sld [smem:[#allocation4 + $0x45]] }
 0x179   : > { %v2113_v52 = vadd.f32 %v491_v49, %v473_v45  ;;  %v887_v49 = vmul.f32 %v886_v38, %v1965_v31 }
 0x17a   : > { %v470_v53 = vpop.permute.xlu1 %469  ;;  %v481_v54 = vpop.permute.xlu0 %480 }
 0x17b   : > { %v474_v61 = vadd.f32 %v470_v53, %v448_v34  ;;  %v486_v63 = vadd.f32 %v481_v54, %v460_v33  ;;  %v824_v34 = vmul.f32 %v822_v15, %v1959_v26  ;;  %v849_v33 = vmul.f32 %v848_v27, %v1953_v22 }
 0x17c   : > { %726 = vrot.lane.b32.xlu1 %v721_v57, %s1620_s0  ;;  %763 = vrot.lane.b32.xlu0 %v759_v58, %s1619_s17  ;;  %v625_v53 = vmul.f32 %v624_v39, %v1917_v60  ;;  %v912_v54 = vstv %s2141_s25  ;;  %s1318_s25 = sld [smem:[#allocation4 + $0xf]] }
 0x17d   : > { %v498_v3 = vadd.f32 %v496_v1, %v486_v63  ;;  %v2124_v6 = vadd.f32 %v492_v2, %v474_v61  ;;  %v888_v63 = vmul.f32 %v886_v38, %v1971_v36  ;;  %v913_v1 = vmul.f32 %v912_v54, %v1965_v31 }
 0x17e   : > { %v483_v7 = vpop.permute.xlu1 %482  ;;  %v519_v9 = vpop.permute.xlu0 %518  ;;  %v914_v15 = vmul.f32 %v912_v54, %v1971_v36 }
 0x17f   : > { %v487_v13 = vadd.f32 %v483_v7, %v461_v19  ;;  %v524_v18 = vadd.f32 %v519_v9, %v498_v3  ;;  %v626_v3 = vmul.f32 %v624_v39, %v1923_v0  ;;  %v951_v7 = vstv %s2149_s12  ;;  %s2240_s12 = sld [smem:[#allocation4 + $0x12]] }
 0x180   : > { %765 = vrot.lane.b32.xlu1 %v760_v11, %s1619_s17  ;;  %789 = vrot.lane.b32.xlu0 %v785_v12, %s1620_s0  ;;  %v688_v9 = vstv %s2154_s24  ;;  %v952_v17 = vmul.f32 %v951_v7, %v1979_v41  ;;  %s2249_s24 = sld [smem:[#allocation4 + $0x15]] }
 0x181   : > { %v499_v20 = vadd.f32 %v497_v44, %v487_v13 }
 0x182   : > { %v521_v21 = vpop.permute.xlu1 %520  ;;  %v545_v23 = vpop.permute.xlu0 %544 }
 0x183   : > { %v550_v48 = vadd.f32 %v545_v23, %v524_v18  ;;  %v525_v28 = vadd.f32 %v521_v21, %v499_v20  ;;  %v689_v20 = vmul.f32 %v688_v9, %v1929_v4  ;;  %v977_v21 = vstv %s2160_s19  ;;  %s2255_s19 = sld [smem:[#allocation4 + $0x18]] }
 0x184   : > { %791 = vrot.lane.b32.xlu1 %v786_v24, %s1620_s0  ;;  %827 = vrot.lane.b32.xlu0 %v823_v30, %s1619_s17  ;;  %v978_v27 = vmul.f32 %v977_v21, %v1979_v41  ;;  %v979_v38 = vmul.f32 %v977_v21, %v1986_v47 }
 0x185   : > { %v563_v29 = vadd.f32 %v561_v25, %v550_v48  ;;  %v953_v25 = vmul.f32 %v951_v7, %v1986_v47 }
 0x186   : > { %v547_v14 = vpop.permute.xlu1 %546  ;;  %v584_v32 = vpop.permute.xlu0 %583 }
 0x187   : > { %v551_v35 = vadd.f32 %v547_v14, %v525_v28  ;;  %v589_v40 = vadd.f32 %v584_v32, %v563_v29  ;;  %v690_v29 = vmul.f32 %v688_v9, %v1935_v8  ;;  %v1015_v14 = vstv %s2168_s13  ;;  %s2260_s13 = sld [smem:[#allocation4 + $0x1b]] }
 0x188   : > { %829 = vrot.lane.b32.xlu1 %v824_v34, %s1619_s17  ;;  %853 = vrot.lane.b32.xlu0 %v849_v33, %s1620_s0  ;;  %v753_v32 = vstv %s2173_s26  ;;  %v1016_v39 = vmul.f32 %v1015_v14, %v2009_v62  ;;  %s2265_s26 = sld [smem:[#allocation4 + $0x1e]] }
 0x189   : > { %v564_v43 = vadd.f32 %v562_v37, %v551_v35 }
 0x18a   : > { %v586_v19 = vpop.permute.xlu1 %585  ;;  %v610_v45 = vpop.permute.xlu0 %609 }
 0x18b   : > { %v615_v51 = vadd.f32 %v610_v45, %v589_v40  ;;  %v590_v57 = vadd.f32 %v586_v19, %v564_v43  ;;  %v754_v43 = vmul.f32 %v753_v32, %v1939_v10  ;;  %v1041_v19 = vstv %s2179_s27  ;;  %s2269_s27 = sld [smem:[#allocation4 + $0x21]] }
 0x18c   : > { %855 = vrot.lane.b32.xlu1 %v850_v46, %s1620_s0  ;;  %891 = vrot.lane.b32.xlu0 %v887_v49, %s1619_s17  ;;  %v1042_v54 = vmul.f32 %v1041_v19, %v2009_v62  ;;  %v1043_v7 = vmul.f32 %v1041_v19, %v2020_v5 }
 0x18d   : > { %v627_v58 = vadd.f32 %v625_v53, %v615_v51  ;;  %v1017_v53 = vmul.f32 %v1015_v14, %v2020_v5 }
 0x18e   : > { %v612_v59 = vpop.permute.xlu1 %611  ;;  %v648_v61 = vpop.permute.xlu0 %647 }
 0x18f   : > { %v616_v2 = vadd.f32 %v612_v59, %v590_v57  ;;  %v653_v11 = vadd.f32 %v648_v61, %v627_v58  ;;  %v755_v58 = vmul.f32 %v753_v32, %v1946_v16  ;;  %v1079_v59 = vstv %s2187_s10  ;;  %s2272_s10 = sld [smem:[#allocation6]] }
 0x190   : > { %893 = vrot.lane.b32.xlu1 %v888_v63, %s1619_s17  ;;  %917 = vrot.lane.b32.xlu0 %v913_v1, %s1620_s0  ;;  %v817_v61 = vstv %s2192_s21  ;;  %v1080_v9 = vmul.f32 %v1079_v59, %v2056_v42  ;;  %s1383_s21 = sshll.u32 %s1684_s2, 8  ;;  %s1182_s2 = scalar_lea.sflag [#allocation9], %s1817_s23 }
 0x191   : > { %v628_v12 = vadd.f32 %v626_v3, %v616_v2 }
 0x192   : > { %v650_v13 = vpop.permute.xlu1 %649  ;;  %v674_v44 = vpop.permute.xlu0 %673 }
 0x193   : > { %v679_v18 = vadd.f32 %v674_v44, %v653_v11  ;;  %v654_v23 = vadd.f32 %v650_v13, %v628_v12  ;;  %v818_v12 = vmul.f32 %v817_v61, %v1953_v22  ;;  %v1105_v13 = vstv %s2198_s18  ;;  %s215_s18 = scalar_lea.vmem [#allocation12], %s1302_s16  ;;  %s1621_s16 = smov [#allocation12]  }
 0x194   : > { %919 = vrot.lane.b32.xlu1 %v914_v15, %s1620_s0  ;;  %956 = vrot.lane.b32.xlu0 %v952_v17, %s1619_s17  ;;  %v1106_v21 = vmul.f32 %v1105_v13, %v2056_v42 }
 0x195   : > { %v691_v24 = vadd.f32 %v689_v20, %v679_v18  ;;  %v1081_v20 = vmul.f32 %v1079_v59, %v2064_v55 }
 0x196   : > { %v676_v30 = vpop.permute.xlu1 %675  ;;  %v712_v48 = vpop.permute.xlu0 %711 }
 0x197   : > { %v680_v28 = vadd.f32 %v676_v30, %v654_v23  ;;  %v717_v34 = vadd.f32 %v712_v48, %v691_v24  ;;  %v819_v24 = vmul.f32 %v817_v61, %v1959_v26  ;;  %v881_v30 = vstv %s2209_s22  ;;  %s1195_s22 = sshll.u32 %s215_s18, 4  ;;  %s2298_s22 = int_to_ptr.vmem [resolvable:$true] %s1195_s22 }
 0x198   : > { %958 = vrot.lane.b32.xlu1 %v953_v25, %s1619_s17  ;;  %982 = vrot.lane.b32.xlu0 %v978_v27, %s1620_s0  ;;  %v882_v32 = vmul.f32 %v881_v30, %v1965_v31 }
 0x199   : > { %v692_v33 = vadd.f32 %v690_v29, %v680_v28  ;;  %v1107_v29 = vmul.f32 %v1105_v13, %v2064_v55 }
 0x19a   : > { %v714_v35 = vpop.permute.xlu1 %713  ;;  %v738_v37 = vpop.permute.xlu0 %737 }
 0x19b   : > { %v743_v40 = vadd.f32 %v738_v37, %v717_v34  ;;  %v718_v45 = vadd.f32 %v714_v35, %v692_v33 }
 0x19c   : > { %984 = vrot.lane.b32.xlu1 %v979_v38, %s1620_s0  ;;  %1020 = vrot.lane.b32.xlu0 %v1016_v39, %s1619_s17  ;;  %v883_v39 = vmul.f32 %v881_v30, %v1971_v36 }
 0x19d   : > { %v756_v46 = vadd.f32 %v754_v43, %v743_v40  ;;  %v946_v40 = vstv %s1366_s1 }
 0x19e   : > { %v740_v49 = vpop.permute.xlu1 %739  ;;  %v777_v51 = vpop.permute.xlu0 %776  ;;  %v948_v61 = vmul.f32 %v946_v40, %v1986_v47 }
 0x19f   : > { %v744_v57 = vadd.f32 %v740_v49, %v718_v45  ;;  %v782_v63 = vadd.f32 %v777_v51, %v756_v46  ;;  %v947_v51 = vmul.f32 %v946_v40, %v1979_v41  ;;  %v1074_v40 = vstv %s1372_s9 }
 0x1a0   : > { %1022 = vrot.lane.b32.xlu1 %v1017_v53, %s1619_s17  ;;  %1046 = vrot.lane.b32.xlu0 %v1042_v54, %s1620_s0 }
 0x1a1   : > { %v757_v1 = vadd.f32 %v755_v58, %v744_v57 }
 0x1a2   : > { %v779_v2 = vpop.permute.xlu1 %778  ;;  %v803_v3 = vpop.permute.xlu0 %802 }
 0x1a3   : > { %v808_v11 = vadd.f32 %v803_v3, %v782_v63  ;;  %v783_v44 = vadd.f32 %v779_v2, %v757_v1 }
 0x1a4   : > { %1048 = vrot.lane.b32.xlu1 %v1043_v7, %s1620_s0  ;;  %1084 = vrot.lane.b32.xlu0 %v1080_v9, %s1619_s17 }
 0x1a5   : > { %v820_v15 = vadd.f32 %v818_v12, %v808_v11 }
 0x1a6   : > { %v805_v17 = vpop.permute.xlu1 %804  ;;  %v841_v18 = vpop.permute.xlu0 %840 }
 0x1a7   : > { %v809_v23 = vadd.f32 %v805_v17, %v783_v44  ;;  %v846_v48 = vadd.f32 %v841_v18, %v820_v15 }
 0x1a8   : > { %1086 = vrot.lane.b32.xlu1 %v1081_v20, %s1619_s17  ;;  %1110 = vrot.lane.b32.xlu0 %v1106_v21, %s1620_s0  ;;  %s1312_s17 = sld [smem:[#allocation4 + $0x9]] }
 0x1a9   : > { %v821_v25 = vadd.f32 %v819_v24, %v809_v23 }
 0x1aa   : > { %v843_v27 = vpop.permute.xlu1 %842  ;;  %v867_v28 = vpop.permute.xlu0 %866 }
 0x1ab   : > { %v872_v14 = vadd.f32 %v867_v28, %v846_v48  ;;  %v847_v34 = vadd.f32 %v843_v27, %v821_v25 }
 0x1ac   : > { %1112 = vrot.lane.b32.xlu1 %v1107_v29, %s1620_s0  ;;  %s1369_s0 = sld [smem:[#allocation4 + $0x42]] }
 0x1ad   : > { %v884_v33 = vadd.f32 %v882_v32, %v872_v14 }
 0x1ae   : > { %v869_v35 = vpop.permute.xlu1 %868  ;;  %v905_v37 = vpop.permute.xlu0 %904  ;;  %v555_v3 = vstv %s1312_s17 }
 0x1af   : > { %v873_v38 = vadd.f32 %v869_v35, %v847_v34  ;;  %v910_v43 = vadd.f32 %v905_v37, %v884_v33  ;;  %v556_v13 = vmul.f32 %v555_v3, %v1903_v50  ;;  %v557_v30 = vmul.f32 %v555_v3, %v1911_v56 }
 0x1b0   : > { %v619_v33 = vstv %s1315_s7  ;;  %s1541_s7 = sshll.u32 %s1621_s16, 4  ;;  %s1542_s7 = int_to_ptr.vmem [resolvable:$false] %s1541_s7 }
 0x1b1   : > { %v885_v19 = vadd.f32 %v883_v39, %v873_v38  ;;  %v620_v39 = vmul.f32 %v619_v33, %v1917_v60  ;;  %v1076_v60 = vmul.f32 %v1074_v40, %v2064_v55  ;;  %s1543_s9 = scalar_lea.vmem %s1542_s7, 512  ;;  %p1544_p1 = scmp.lt.s32.totalorder %s2298_s22, %s1542_s7 }
 0x1b2   : > { %v907_v45 = vpop.permute.xlu1 %906  ;;  %v931_v46 = vpop.permute.xlu0 %930  ;;  %v1010_v44 = vstv %s1369_s0  ;;  %s2296_s0 = scalar_lea.hbm %s2345_s5, %s1383_s21 }
 0x1b3   : > { %v936_v49 = vadd.f32 %v931_v46, %v910_v43  ;;  %v911_v53 = vadd.f32 %v907_v45, %v885_v19  ;;  %v1011_v48 = vmul.f32 %v1010_v44, %v2009_v62  ;;  %v1012_v14 = vmul.f32 %v1010_v44, %v2020_v5 }
 0x1b5   : > { %v949_v54 = vadd.f32 %v947_v51, %v936_v49 }
 0x1b6   : > { %v933_v57 = vpop.permute.xlu1 %932  ;;  %v506_v58 = vpop.permute.xlu0 %505 }
 0x1b7   : > { %v937_v59 = vadd.f32 %v933_v57, %v911_v53  ;;  %v511_v7 = vadd.f32 %v506_v58, %v2113_v52  ;;  %v1075_v57 = vmul.f32 %v1074_v40, %v2056_v42 }
 0x1b9   : > { %v950_v63 = vadd.f32 %v948_v61, %v937_v59 }
 0x1ba   : > { %v508_v1 = vpop.permute.xlu1 %507  ;;  %v970_v2 = vpop.permute.xlu0 %969 }
 0x1bb   : > { %v512_v15 = vadd.f32 %v508_v1, %v2124_v6  ;;  %v975_v17 = vadd.f32 %v970_v2, %v949_v54  ;;  %v621_v54 = vmul.f32 %v619_v33, %v1923_v0 }
 0x1be   : > { %v972_v9 = vpop.permute.xlu1 %971  ;;  %v532_v11 = vpop.permute.xlu0 %531 }
 0x1bf   : > { %v537_v12 = vadd.f32 %v532_v11, %v511_v7  ;;  %v976_v52 = vadd.f32 %v972_v9, %v950_v63  ;;  %v683_v11 = vstv %s1318_s25 }
 0x1c0   : > { %v684_v0 = vmul.f32 %v683_v11, %v1929_v4 }
 0x1c1   : > { %v558_v18 = vadd.f32 %v556_v13, %v537_v12 }
 0x1c2   : > { %v534_v20 = vpop.permute.xlu1 %533  ;;  %v996_v21 = vpop.permute.xlu0 %995 }
 0x1c3   : > { %v538_v23 = vadd.f32 %v534_v20, %v512_v15  ;;  %v1001_v24 = vadd.f32 %v996_v21, %v975_v17 }
 0x1c5   : > { %v559_v25 = vadd.f32 %v557_v30, %v538_v23  ;;  %v1013_v27 = vadd.f32 %v1011_v48, %v1001_v24  ;;  %v685_v48 = vmul.f32 %v683_v11, %v1935_v8 }
 0x1c6   : > { %v998_v28 = vpop.permute.xlu1 %997  ;;  %v571_v29 = vpop.permute.xlu0 %570 }
 0x1c7   : > { %v1002_v50 = vadd.f32 %v998_v28, %v976_v52  ;;  %v576_v35 = vadd.f32 %v571_v29, %v558_v18 }
 0x1c9   : > { %v1014_v6 = vadd.f32 %v1012_v14, %v1002_v50  ;;  %v748_v14 = vstv %s2240_s12 }
 0x1ca   : > { %v573_v32 = vpop.permute.xlu1 %572  ;;  %v1034_v34 = vpop.permute.xlu0 %1033 }
 0x1cb   : > { %v577_v43 = vadd.f32 %v573_v32, %v559_v25  ;;  %v1039_v19 = vadd.f32 %v1034_v34, %v1013_v27 }
 0x1ce   : > { %v1036_v37 = vpop.permute.xlu1 %1035  ;;  %v597_v38 = vpop.permute.xlu0 %596 }
 0x1cf   : > { %v602_v56 = vadd.f32 %v597_v38, %v576_v35  ;;  %v1040_v58 = vadd.f32 %v1036_v37, %v1014_v6  ;;  %v749_v38 = vmul.f32 %v748_v14, %v1939_v10 }
 0x1d1   : > { %v622_v45 = vadd.f32 %v620_v39, %v602_v56 }
 0x1d2   : > { %v599_v46 = vpop.permute.xlu1 %598  ;;  %v1060_v49 = vpop.permute.xlu0 %1059 }
 0x1d3   : > { %v603_v51 = vadd.f32 %v599_v46, %v577_v43  ;;  %v1065_v53 = vadd.f32 %v1060_v49, %v1039_v19  ;;  %v750_v46 = vmul.f32 %v748_v14, %v1946_v16  ;;  %v812_v49 = vstv %s2249_s24 }
 0x1d4   : > { %v813_v10 = vmul.f32 %v812_v49, %v1953_v22  ;;  %v814_v16 = vmul.f32 %v812_v49, %v1959_v26 }
 0x1d5   : > { %v623_v59 = vadd.f32 %v621_v54, %v603_v51  ;;  %v1077_v61 = vadd.f32 %v1075_v57, %v1065_v53 }
 0x1d6   : > { %v1062_v63 = vpop.permute.xlu1 %1061  ;;  %v635_v1 = vpop.permute.xlu0 %634 }
 0x1d7   : > { %v1066_v2 = vadd.f32 %v1062_v63, %v1040_v58  ;;  %v640_v12 = vadd.f32 %v635_v1, %v622_v45 }
 0x1d9   : > { %v1078_v3 = vadd.f32 %v1076_v60, %v1066_v2 }
 0x1da   : > { %v637_v7 = vpop.permute.xlu1 %636  ;;  %v1098_v9 = vpop.permute.xlu0 %1097 }
 0x1db   : > { %v641_v17 = vadd.f32 %v637_v7, %v623_v59  ;;  %v1103_v18 = vadd.f32 %v1098_v9, %v1077_v61  ;;  %v876_v7 = vstv %s2255_s19 }
 0x1de   : > { %v1100_v13 = vpop.permute.xlu1 %1099  ;;  %v661_v44 = vpop.permute.xlu0 %660 }
 0x1df   : > { %v666_v15 = vadd.f32 %v661_v44, %v640_v12  ;;  %v1104_v52 = vadd.f32 %v1100_v13, %v1078_v3 }
 0x1e1   : > { %v686_v20 = vadd.f32 %v684_v0, %v666_v15  ;;  %v877_v0 = vmul.f32 %v876_v7, %v1965_v31 }
 0x1e2   : > { %v663_v21 = vpop.permute.xlu1 %662  ;;  %v1124_v23 = vpop.permute.xlu0 %1123 }
 0x1e3   : > { %v667_v24 = vadd.f32 %v663_v21, %v641_v17  ;;  %v2242_v30 = vadd.f32 %v1124_v23, %v1103_v18 }
 0x1e5   : > { %v1137_v25 = vand.u32 2147483647, %v2242_v30  ;;  %v687_v27 = vadd.f32 %v685_v48, %v667_v24  ;;  %v878_v24 = vmul.f32 %v876_v7, %v1971_v36  ;;  %v941_v48 = vstv %s2260_s13 }
 0x1e6   : > { %v1126_v28 = vpop.permute.xlu1 %1125  ;;  %v699_v29 = vpop.permute.xlu0 %698  ;;  %vm1133_vm5 = vcmp.ne.f32.partialorder %v2242_v30, %v2242_v30 }
 0x1e7   : > { %v1139_v4 = vsub.f32 0.0, %v1137_v25  ;;  %v2246_v50 = vadd.f32 %v1126_v28, %v1104_v52  ;;  %v704_v34 = vadd.f32 %v699_v29, %v686_v20 }
 0x1e9   : > { %v1141_v6 = vmul.f32 1.442695, %v1139_v4  ;;  %v1138_v32 = vand.u32 2147483647, %v2246_v50  ;;  %vm1134_vm6 = vcmp.ne.f32.partialorder %v2246_v50, %v2246_v50 }
 0x1ea   : > { %v701_v33 = vpop.permute.xlu1 %700  ;;  %v725_v35 = vpop.permute.xlu0 %724 }
 0x1eb   : > { %1445 = vpow2.f32 %v1141_v6  ;;  %v1140_v8 = vsub.f32 0.0, %v1138_v32  ;;  %v730_v37 = vadd.f32 %v725_v35, %v704_v34  ;;  %v705_v39 = vadd.f32 %v701_v33, %v687_v27 }
 0x1ec   : > { %v942_v6 = vmul.f32 %v941_v48, %v1979_v41 }
 0x1ed   : > { %v1143_v56 = vmul.f32 1.442695, %v1140_v8  ;;  %v751_v40 = vadd.f32 %v749_v38, %v730_v37 }
 0x1ee   : > { %v727_v43 = vpop.permute.xlu1 %726  ;;  %v764_v19 = vpop.permute.xlu0 %763 }
 0x1ef   : > { %1447 = vpow2.f32 %v1143_v56  ;;  %v731_v45 = vadd.f32 %v727_v43, %v705_v39  ;;  %v769_v51 = vadd.f32 %v764_v19, %v751_v40  ;;  %v943_v40 = vmul.f32 %v941_v48, %v1986_v47 }
 0x1f0   : > { %v1005_v19 = vstv %s2265_s26 }
 0x1f1   : > { %v752_v53 = vadd.f32 %v750_v46, %v731_v45  ;;  %v1006_v47 = vmul.f32 %v1005_v19, %v2009_v62  ;;  %v1167_v62 = vstv %s2272_s10 }
 0x1f2   : > { %v766_v54 = vpop.permute.xlu1 %765  ;;  %v790_v57 = vpop.permute.xlu0 %789 }
 0x1f3   : > { %v795_v58 = vadd.f32 %v790_v57, %v769_v51  ;;  %v770_v61 = vadd.f32 %v766_v54, %v752_v53  ;;  %v1131_v51 = vmax.f32 %v2242_v30, 0.0 }
 0x1f5   : > { %v1446_v59 = vpop.eup %1445  ;;  %v815_v63 = vadd.f32 %v813_v10, %v795_v58 }
 0x1f6   : > { %v1145_v1 = vadd.f32 1.0, %v1446_v59  ;;  %v792_v2 = vpop.permute.xlu1 %791  ;;  %v828_v60 = vpop.permute.xlu0 %827  ;;  %v1148_v26 = vmul.f32 -0.5, %v1446_v59  ;;  %v1151_v32 = vand.u32 2147483647, %v1446_v59 }
 0x1f7   : > { %v796_v3 = vadd.f32 %v792_v2, %v770_v61  ;;  %v833_v11 = vadd.f32 %v828_v60, %v815_v63 }
 0x1f8   : > { %1449 = vlog2.f32 %v1145_v1  ;;  %v1149_v4 = vadd.f32 1.0, %v1148_v26  ;;  %vm1152_vm3 = vcmp.lt.f32.partialorder %v1151_v32, 0.0004427343  ;;  %v1132_v1 = vmax.f32 %v2246_v50, 0.0 }
 0x1f9   : > { %v1448_v9 = vpop.eup %1447  ;;  %v816_v12 = vadd.f32 %v814_v16, %v796_v3  ;;  %v1007_v16 = vmul.f32 %v1005_v19, %v2020_v5 }
 0x1fa   : > { %v1154_v13 = vadd.f32 1.0, %v1448_v9  ;;  %v830_v44 = vpop.permute.xlu1 %829  ;;  %v854_v22 = vpop.permute.xlu0 %853  ;;  %v1157_v14 = vmul.f32 -0.5, %v1448_v9  ;;  %v1150_v38 = vmul.f32 %v1446_v59, %v1149_v4  ;;  %v1160_v43 = vand.u32 2147483647, %v1448_v9 }
 0x1fb   : > { %v859_v15 = vadd.f32 %v854_v22, %v833_v11  ;;  %v834_v17 = vadd.f32 %v830_v44, %v816_v12 }
 0x1fc   : > { %1451 = vlog2.f32 %v1154_v13  ;;  %v1158_v56 = vadd.f32 1.0, %v1157_v14  ;;  %vm1161_vm4 = vcmp.lt.f32.partialorder %v1160_v43, 0.0004427343  ;;  %v1173_v14 = vld [vmem:[%s1831_s20 + $0x8] sm:$0xff] }
 0x1fd   : > { %v879_v18 = vadd.f32 %v877_v0, %v859_v15 }
 0x1fe   : > { %v856_v20 = vpop.permute.xlu1 %855  ;;  %v892_v21 = vpop.permute.xlu0 %891  ;;  %v1159_v57 = vmul.f32 %v1448_v9, %v1158_v56  ;;  %v1069_v9 = vstv %s2269_s27 }
 0x1ff   : > { %v860_v23 = vadd.f32 %v856_v20, %v834_v17  ;;  %v897_v52 = vadd.f32 %v892_v21, %v879_v18  ;;  %v1070_v0 = vmul.f32 %v1069_v9, %v2056_v42 }
 0x201   : > { %v880_v25 = vadd.f32 %v878_v24, %v860_v23  ;;  %v1071_v23 = vmul.f32 %v1069_v9, %v2064_v55 }
 0x202   : > { %v1450_v27 = vpop.eup %1449  ;;  %v894_v28 = vpop.permute.xlu1 %893 }
 0x203   : > { %v918_v29 = vpop.permute.xlu0 %917  ;;  %v1147_v34 = vmul.f32 0.6931472, %v1450_v27  ;;  %v898_v33 = vadd.f32 %v894_v28, %v880_v25 }
 0x204   : > { %v923_v31 = vadd.f32 %v918_v29, %v897_v52  ;;  %v1172_v52 = vld [vmem:[%s1831_s20] sm:$0xff]  ;;  %s1537_s20 = scalar_lea.vmem %s2298_s22, 256 }
 0x205   : > { %v1153_v41 = vsel %vm1152_vm3, %v1150_v38, %v1147_v34  ;;  %p1538_p9 = scmp.ne.s32.totalorder %s2298_s22, %s1537_s20  ;;  %p1545_p3 = scmp.lt.s32.totalorder %s1543_s9, %s1537_s20 }
 0x206   : > { %v944_v35 = vadd.f32 %v942_v6, %v923_v31  ;;  %v1452_v8 = vpop.eup %1451  ;;  %v920_v36 = vpop.permute.xlu1 %919  ;;  %v1163_v10 = vadd.f32 %v1153_v41, %v1131_v51 }
 0x207   : > { %v957_v37 = vpop.permute.xlu0 %956  ;;  %v924_v39 = vadd.f32 %v920_v36, %v898_v33  ;;  %v1156_v45 = vmul.f32 0.6931472, %v1452_v8  ;;  %p1539_p8 = pnand %p1538_p9, %p2357_p11  ;;  %p1546_p5 = por %p1545_p3, %p1544_p1 }
 0x208   : > { %v962_v46 = vadd.f32 %v957_v37, %v944_v35  ;;  %v1165_v11 = vsel %vm1133_vm5, %v2242_v30, %v1163_v10 }
 0x209   : > { %v945_v49 = vadd.f32 %v943_v40, %v924_v39  ;;  %v1162_v59 = vsel %vm1161_vm4, %v1159_v57, %v1156_v45  ;;  %v1168_v17 = vmul.f32 %v1167_v62, %v1165_v11  ;;  %p1540_p6 = pneg %p1539_p8 }
 0x20a   : > { %v959_v53 = vpop.permute.xlu1 %958  ;;  %v1164_v7 = vadd.f32 %v1162_v59, %v1132_v1 }
 0x20b   : > { %v983_v54 = vpop.permute.xlu0 %982  ;;  %v963_v61 = vadd.f32 %v959_v53, %v945_v49  ;;  %v1170_v24 = vadd.f32 1e-05, %v1168_v17  ;;  %p1547_p7 = pnand %p1546_p5, %p1540_p6 }
 0x20c   : > { %v988_v58 = vadd.f32 %v983_v54, %v962_v46  ;;  %v1166_v18 = vsel %vm1134_vm6, %v2246_v50, %v1164_v7 }
 0x20d   : > { %v1169_v48 = vmul.f32 %v1167_v62, %v1166_v18  ;;  %v1174_v4 = vmul.f32 %v1172_v52, %v1170_v24 }
 0x20e   : > { %v1008_v63 = vadd.f32 %v1006_v47, %v988_v58  ;;  %v985_v2 = vpop.permute.xlu1 %984 }
 0x20f   : > { %v1021_v60 = vpop.permute.xlu0 %1020  ;;  %v989_v3 = vadd.f32 %v985_v2, %v963_v61  ;;  %v1171_v50 = vadd.f32 1e-05, %v1169_v48 }
 0x210   : > { %v1026_v12 = vadd.f32 %v1021_v60, %v1008_v63 }
 0x211   : > { %v1009_v13 = vadd.f32 %v1007_v16, %v989_v3  ;;  %v1175_v34 = vmul.f32 %v1173_v14, %v1171_v50 }
 0x212   : > { %v1023_v44 = vpop.permute.xlu1 %1022 }
 0x213   : > { %v1047_v22 = vpop.permute.xlu0 %1046  ;;  %v1027_v5 = vadd.f32 %v1023_v44, %v1009_v13 }
 0x214   : > { %v1052_v15 = vadd.f32 %v1047_v22, %v1026_v12 }
 0x216   : > { %v1072_v20 = vadd.f32 %v1070_v0, %v1052_v15  ;;  %v1049_v21 = vpop.permute.xlu1 %1048 }
 0x217   : > { %v1085_v30 = vpop.permute.xlu0 %1084  ;;  %v1053_v26 = vadd.f32 %v1049_v21, %v1027_v5 }
 0x218   : > { %v1090_v25 = vadd.f32 %v1085_v30, %v1072_v20 }
 0x219   : > { %v1073_v27 = vadd.f32 %v1071_v23, %v1053_v26 }
 0x21a   : > { %v1087_v28 = vpop.permute.xlu1 %1086 }
 0x21b   : > { %v1111_v42 = vpop.permute.xlu0 %1110  ;;  %v1091_v31 = vadd.f32 %v1087_v28, %v1073_v27 }
 0x21c   : > { %v1116_v29 = vadd.f32 %v1111_v42, %v1090_v25 }
 0x21e   : > { %v1176_v6 = vadd.f32 %v1174_v4, %v1116_v29  ;;  %v1113_v55 = vpop.permute.xlu1 %1112 }
 0x21f   : > { %v1117_v32 = vadd.f32 %v1113_v55, %v1091_v31 }
 0x220   : > { %1179 = vst.msk [vmem:[%s215_s18] sm:$0xff] %vm1178_vm7, %v1176_v6 }
 0x221   : > { %v1177_v33 = vadd.f32 %v1175_v34, %v1117_v32 }
 0x223   : > { %1180 = vst.msk [vmem:[%s215_s18 + $0x8] sm:$0xff] %vm1178_vm7, %v1177_v33 }
 0x224   : > { %1550 = shalt.err (!%p1547_p7)
}
 0x225   : > { %s1551_s25 = scalar_lea.hbm %s2296_s0, 256  ;;  %s1555_s19 = scalar_lea.hbm %s2345_s5, 512 }
 0x226   : > { %p1552_p13 = scmp.ne.s32.totalorder %s2296_s0, %s1551_s25  ;;  %p1556_p12 = scmp.lt.u32.totalorder %s2296_s0, %s2345_s5 }
 0x227   : > { %p1557_p0 = scmp.lt.u32.totalorder %s1555_s19, %s1551_s25  ;;  %p1559_p9 = scmp.lt.u32.totalorder %s1551_s25, %s2296_s0 }
 0x228   : > { %p1553_p4 = pnand %p1552_p13, %p2357_p11 }
 0x229   : > { %p1558_p2 = por %p1557_p0, %p1556_p12 }
 0x22a   : > { %p1554_p10 = pneg %p1553_p4 }
 0x22b   : > { %p1560_p8 = por %p1559_p9, %p1558_p2 }
 0x22d   : > { %p1561_p6 = pnand %p1560_p8, %p1554_p10 }
 0x22f   : > { %1564 = shalt.err (!%p1561_p6)
}
 0x230   : > { %s1622_s27 = smov 128   ;;  %s1623_s10 = smov 8  }
 0x231   : > { %1388 = dma.vmem_to_hbm [thread:$0]  (%p2357_p11), %s2298_s22, 256, %s2296_s0, %s1182_s2, %s1622_s27, %s1622_s27, %s1623_s10  }
 0x232 PF: > { %s1210_s21 = sand.u32 1, %s1597_s28   ;;  %p2358_p1 = scmp.ne.s32.totalorder %s2353_s15, 0 }
 0x233   : > { %p2359_p3 = scmp.ge.s32.totalorder %s1609_s6, 2  ;;  %s1211_s18 = scalar_lea.sflag [#allocation9], %s1210_s21 }
 0x235   : > { %p1398_p5 = pnand %p2359_p3, %p2358_p1 }
 0x237   : > { %1592 = dma.done.wait (!%p1398_p5), %s1211_s18, 256  }
 0x238   : > { %1594 = vsyncadd (!%p1398_p5), %s1211_s18, 4294967040  ;;  %p32_p7 = scmp.ge.s32.totalorder %s1688_s8, 4   ;;  %s2360_s28 = smov %s1601_s29 }
 0x239   : > { %s2361_s29 = smov %s1605_s30  ;;  %s2362_s30 = smov %s1700_s11 }
 0x23a   : > { %s2363_s6 = smov %s1688_s8  ;;  %34 = sbr.rel (!%p32_p7) target bundleno = 32 (0x20), region = 89 }
 0x241   :  { %1216 = vsyncpa [#allocation8], 1 }
 0x242   :  { %1218 = vsyncpa [#allocation8 + $0x1], 1 }
 0x243   :  { %1219 = vsyncpa [#allocation11], 1 }
 0x244   :  { %1221 = vsyncpa [#allocation11 + $0x1], 1 }
 0x245   :  { %1222 = vsyncpa [#allocation9], 1 }
 0x246   :  { %1224 = vsyncpa [#allocation9 + $0x1], 1 }

</bundles_post_ra>
